<compile_context>
chip_gen: v5e
topology: v5e:2x2
jax: 0.10.0
libtpu: 0.0.40
codegen_flags: <defaults>
</compile_context>

<pallas_src>
import functools
import math

import jax
import jax.numpy as jnp
from jax.experimental import pallas as pl
from jax.experimental.pallas import tpu as pltpu


# ------------------------------ shared numerics ------------------------------

def _layer_norm(x, w, b, eps=1e-5):
    # x: (..., E); w/b: (1, E). Biased variance, matching torch.nn.LayerNorm.
    mean = jnp.mean(x, axis=-1, keepdims=True)
    xc = x - mean
    var = jnp.mean(xc * xc, axis=-1, keepdims=True)
    inv = jax.lax.rsqrt(var + eps)
    return xc * inv * w + b


# ------------------------------- Pallas kernel -------------------------------

def fused_encoder_kernel(
    x_ref,       # (Bt, S, E)   batch tile (read only at l == 0)
    wqkv_ref,    # (1, E, 3E)   pre-transposed in_proj weight, Q rows pre-scaled, bf16
    bqkv_ref,    # (1, 1, 3E)   in_proj bias, Q part pre-scaled, f32
    wo_ref,      # (1, E, E)    pre-transposed out_proj weight, bf16
    bo_ref,      # (1, 1, E)
    ln1w_ref,    # (1, 1, E)
    ln1b_ref,    # (1, 1, E)
    w1_ref,      # (1, E, F)    pre-transposed linear1 weight, bf16
    b1_ref,      # (1, 1, F)
    w2_ref,      # (1, F, E)    pre-transposed linear2 weight, bf16
    b2_ref,      # (1, 1, E)
    ln2w_ref,    # (1, 1, E)
    ln2b_ref,    # (1, 1, E)
    o_ref,       # (Bt, S, E)   written only at l == L-1
    xc_ref,      # VMEM scratch (Bt*S, E) f32 -- activation carried across the layer axis
    *,
    n_heads: int,
):
    l = pl.program_id(1)
    Bt, S, E = x_ref.shape
    H = n_heads
    Dh = E // H
    mxu = wqkv_ref.dtype   # bf16 operands for the MXU; accumulation is f32

    # Initialize the carried activation at the first layer of this batch tile.
    @pl.when(l == 0)
    def _():
        xc_ref[...] = x_ref[...].astype(jnp.float32).reshape(Bt * S, E)

    x = xc_ref[...]                                                  # (Bt*S, E) f32

    # ----- Multi-head self attention -----
    # Weights are (in, out); Q columns already pre-scaled by 1/sqrt(Dh).
    qkv = jnp.dot(x.astype(mxu), wqkv_ref[0],
                  preferred_element_type=jnp.float32) + bqkv_ref[0]  # (Bt*S, 3E)
    q = qkv[:, 0 * E:1 * E]
    k = qkv[:, 1 * E:2 * E]
    v = qkv[:, 2 * E:3 * E]

    def split_heads(t):
        # (Bt*S, E) -> (Bt*H, S, Dh), bf16 for the MXU.
        t = t.reshape(Bt, S, H, Dh).transpose(0, 2, 1, 3)
        return t.reshape(Bt * H, S, Dh).astype(mxu)

    qh, kh, vh = split_heads(q), split_heads(k), split_heads(v)

    s = jnp.einsum('gqd,gkd->gqk', qh, kh,
                   preferred_element_type=jnp.float32)               # (Bt*H, S, S) f32
    s = s - jnp.max(s, axis=-1, keepdims=True)
    p = jnp.exp(s)
    p = p * pl.reciprocal(jnp.sum(p, axis=-1, keepdims=True), approx=True)
    ctx = jnp.einsum('gqk,gkd->gqd', p.astype(mxu), vh,
                     preferred_element_type=jnp.float32)             # (Bt*H, S, Dh) f32
    ctx = ctx.reshape(Bt, H, S, Dh).transpose(0, 2, 1, 3).reshape(Bt * S, E)

    attn = jnp.dot(ctx.astype(mxu), wo_ref[0],
                   preferred_element_type=jnp.float32) + bo_ref[0]

    # residual + LayerNorm1  (dropout1 == identity in eval)
    x = _layer_norm(x + attn, ln1w_ref[0], ln1b_ref[0])

    # ----- Feed-forward -----
    h1 = jnp.dot(x.astype(mxu), w1_ref[0],
                 preferred_element_type=jnp.float32) + b1_ref[0]
    h1 = jnp.maximum(h1, 0.0)                                        # ReLU
    h2 = jnp.dot(h1.astype(mxu), w2_ref[0],
                 preferred_element_type=jnp.float32) + b2_ref[0]

    # residual + LayerNorm2  (dropout2 == identity in eval)
    x = _layer_norm(x + h2, ln2w_ref[0], ln2b_ref[0])

    xc_ref[...] = x

    # Single HBM writeback for this batch tile after the last layer.
    @pl.when(l == pl.num_programs(1) - 1)
    def _():
        o_ref[...] = x.reshape(Bt, S, E).astype(o_ref.dtype)


# ------------------------------- JAX wrapper ---------------------------------

_WEIGHT_ORDER = ("wqkv_t", "bqkv", "wo_t", "bo", "ln1w", "ln1b",
                 "w1_t", "b1", "w2_t", "b2", "ln2w", "ln2b")


def pack_params(layers_params, *, embed_dim, n_heads, mxu_dtype=jnp.bfloat16):
    """Stack per-layer PyTorch-layout params on a leading L axis, pre-transpose
    weights to (in, out), fold 1/sqrt(Dh) into the Q projection, cast MXU operands."""
    E = embed_dim
    Dh = E // n_heads
    scale = 1.0 / math.sqrt(Dh)

    def stack(name):
        return jnp.stack([p[name] for p in layers_params], axis=0)

    wqkv = stack("wqkv")                               # (L, 3E, E) (out, in)
    bqkv = stack("bqkv")                               # (L, 1, 3E)
    q_scale = jnp.concatenate(
        [jnp.full((E,), scale, jnp.float32), jnp.ones((2 * E,), jnp.float32)])
    wqkv = wqkv * q_scale[None, :, None]
    bqkv = bqkv * q_scale[None, None, :]

    return {
        "wqkv_t": jnp.transpose(wqkv, (0, 2, 1)).astype(mxu_dtype),        # (L, E, 3E)
        "bqkv":   bqkv.astype(jnp.float32),
        "wo_t":   jnp.transpose(stack("wo"), (0, 2, 1)).astype(mxu_dtype), # (L, E, E)
        "bo":     stack("bo").astype(jnp.float32),
        "ln1w":   stack("ln1w").astype(jnp.float32),
        "ln1b":   stack("ln1b").astype(jnp.float32),
        "w1_t":   jnp.transpose(stack("w1"), (0, 2, 1)).astype(mxu_dtype), # (L, E, F)
        "b1":     stack("b1").astype(jnp.float32),
        "w2_t":   jnp.transpose(stack("w2"), (0, 2, 1)).astype(mxu_dtype), # (L, F, E)
        "b2":     stack("b2").astype(jnp.float32),
        "ln2w":   stack("ln2w").astype(jnp.float32),
        "ln2b":   stack("ln2b").astype(jnp.float32),
    }


def _vmem_limit_bytes(Bt, S, E, F, H):
    """Rough per-grid-step VMEM footprint; pipeline double-buffers the per-layer
    weight blocks and the activation tile."""
    w_bytes = 2 * (3 * E * E + E * E + E * F + F * E)        # bf16 matmul weights / layer
    small = 4 * (3 * E + E + F + 5 * E)                      # f32 biases + LN params
    act = 4 * Bt * S * (3 * E + 4 * E + F)                   # qkv, ctx/attn/residuals, ffn
    scores = 4 * Bt * H * S * S * 2                          # s and p, f32
    io = 4 * Bt * S * E * 2 * 2                              # x in + out, double-buffered
    est = 2 * (w_bytes + small) + act + scores + io
    return int(min(128 * 1024 * 1024, max(32 * 1024 * 1024, 2 * est)))


def transformer_encoder(x, layers_params, *, embed_dim, n_heads,
                        batch_tile=1, mxu_dtype=jnp.bfloat16):
    """x: (S, B, E) -- PyTorch default layout for nn.TransformerEncoder."""
    S, B, E = x.shape
    assert E == embed_dim and E % n_heads == 0
    assert B % batch_tile == 0
    n_layers = len(layers_params)

    packed = pack_params(layers_params, embed_dim=embed_dim, n_heads=n_heads,
                         mxu_dtype=mxu_dtype)
    weights = [packed[k] for k in _WEIGHT_ORDER]
    ffn_dim = packed["w1_t"].shape[-1]

    # TODO(synk): for E >= 128 this (S,B,E)->(B,S,E) transpose could be folded into the
    # BlockSpec; kept in the wrapper because a size-1 second-minor block would violate
    # the (8,128) tiling rule at small B.
    xb = jnp.transpose(x, (1, 0, 2))                                # (B, S, E)

    def wspec(arr):
        nd = arr.ndim
        return pl.BlockSpec((1,) + arr.shape[1:],
                            lambda b, l, _nd=nd: (l,) + (0,) * (_nd - 1))

    in_specs = [pl.BlockSpec((batch_tile, S, E), lambda b, l: (b, 0, 0))]
    in_specs += [wspec(w) for w in weights]

    kernel = functools.partial(fused_encoder_kernel, n_heads=n_heads)

    out = pl.pallas_call(
        kernel,
        out_shape=jax.ShapeDtypeStruct((B, S, E), x.dtype),
        grid=(B // batch_tile, n_layers),     # batch parallel, layers sequential (carry)
        in_specs=in_specs,
        out_specs=pl.BlockSpec((batch_tile, S, E), lambda b, l: (b, 0, 0)),
        scratch_shapes=[pltpu.VMEM((batch_tile * S, E), jnp.float32)],
        compiler_params=pltpu.CompilerParams(
            dimension_semantics=("parallel", "arbitrary"),
            vmem_limit_bytes=_vmem_limit_bytes(batch_tile, S, E, ffn_dim, n_heads)),
    )(xb, *weights)

    return jnp.transpose(out, (1, 0, 2))                            # back to (S, B, E)


# --------------------------- pure-JAX reference ------------------------------

def _ref_layer(xb, p, n_heads):
    B, S, E = xb.shape
    H, Dh = n_heads, E // n_heads
    qkv = jnp.einsum('bse,fe->bsf', xb, p["wqkv"]) + p["bqkv"][0]
    q, k, v = qkv[..., :E], qkv[..., E:2 * E], qkv[..., 2 * E:]
    q = q.reshape(B, S, H, Dh).transpose(0, 2, 1, 3) / math.sqrt(Dh)
    k = k.reshape(B, S, H, Dh).transpose(0, 2, 1, 3)
    v = v.reshape(B, S, H, Dh).transpose(0, 2, 1, 3)
    s = jnp.einsum('bhqd,bhkd->bhqk', q, k)
    pm = jax.nn.softmax(s, axis=-1)
    ctx = jnp.einsum('bhqk,bhkd->bhqd', pm, v).transpose(0, 2, 1, 3).reshape(B, S, E)
    attn = jnp.einsum('bse,fe->bsf', ctx, p["wo"]) + p["bo"][0]
    x1 = _layer_norm(xb + attn, p["ln1w"], p["ln1b"])
    h = jax.nn.relu(jnp.einsum('bse,fe->bsf', x1, p["w1"]) + p["b1"][0])
    h2 = jnp.einsum('bsf,ef->bse', h, p["w2"]) + p["b2"][0]
    return _layer_norm(x1 + h2, p["ln2w"], p["ln2b"])


def reference_forward(x, layers_params, *, n_heads):
    xb = jnp.transpose(x, (1, 0, 2)).astype(jnp.float32)
    for p in layers_params:
        xb = _ref_layer(xb, p, n_heads)
    return jnp.transpose(xb, (1, 0, 2))


# ----------------------------- parameter init --------------------------------

def init_layer_params(key, embed_dim, ffn_dim):
    E, F = embed_dim, ffn_dim
    ks = jax.random.split(key, 6)
    scale = 0.02
    return {
        # MultiheadAttention (PyTorch layout: weight is (out, in))
        "wqkv": scale * jax.random.normal(ks[0], (3 * E, E), jnp.float32),
        "bqkv": jnp.zeros((1, 3 * E), jnp.float32),
        "wo":   scale * jax.random.normal(ks[1], (E, E), jnp.float32),
        "bo":   jnp.zeros((1, E), jnp.float32),
        # LayerNorm1
        "ln1w": jnp.ones((1, E), jnp.float32),
        "ln1b": jnp.zeros((1, E), jnp.float32),
        # FFN
        "w1":   scale * jax.random.normal(ks[2], (F, E), jnp.float32),
        "b1":   jnp.zeros((1, F), jnp.float32),
        "w2":   scale * jax.random.normal(ks[3], (E, F), jnp.float32),
        "b2":   jnp.zeros((1, E), jnp.float32),
        # LayerNorm2
        "ln2w": jnp.ones((1, E), jnp.float32),
        "ln2b": jnp.zeros((1, E), jnp.float32),
    }


# ---------------------------------- main --------------------------------------

if __name__ == "__main__":
    # Shapes consistent with the module: embed_dim=32, n_heads=4, n_layers=2,
    # mlp_ratio=2.0, dropout=0.0 (dropout only acts in training mode; eval = identity).
    S, B, E = 8, 2, 32
    n_heads = 4
    n_layers = 2
    mlp_ratio = 2.0
    ffn_dim = int(E * mlp_ratio)

    root = jax.random.PRNGKey(0)
    key_x, key_p = jax.random.split(root)
    x = jax.random.normal(key_x, (S, B, E), jnp.float32)

    layer_keys = jax.random.split(key_p, n_layers)
    layers_params = [init_layer_params(k, E, ffn_dim) for k in layer_keys]

    out = transformer_encoder(x, layers_params, embed_dim=E, n_heads=n_heads,
                              batch_tile=1)
    out = jax.block_until_ready(out)

    ref = reference_forward(x, layers_params, n_heads=n_heads)

    assert out.shape == (S, B, E), out.shape
    assert jnp.all(jnp.isfinite(out))
    max_err = float(jnp.max(jnp.abs(out - ref)))
    assert jnp.allclose(out, ref, atol=5e-2, rtol=5e-2), max_err
    print("KERNEL_OK")
</pallas_src>

<mosaic_0001>
module attributes {stable_mosaic.version = 11 : i64} {
  func.func @fused_encoder_kernel(%arg0: i32, %arg1: i32, %arg2: memref<1x8x32xf32, #tpu.memory_space<vmem>>, %arg3: memref<1x32x96xbf16, #tpu.memory_space<vmem>>, %arg4: memref<1x1x96xf32, #tpu.memory_space<vmem>>, %arg5: memref<1x32x32xbf16, #tpu.memory_space<vmem>>, %arg6: memref<1x1x32xf32, #tpu.memory_space<vmem>>, %arg7: memref<1x1x32xf32, #tpu.memory_space<vmem>>, %arg8: memref<1x1x32xf32, #tpu.memory_space<vmem>>, %arg9: memref<1x32x64xbf16, #tpu.memory_space<vmem>>, %arg10: memref<1x1x64xf32, #tpu.memory_space<vmem>>, %arg11: memref<1x64x32xbf16, #tpu.memory_space<vmem>>, %arg12: memref<1x1x32xf32, #tpu.memory_space<vmem>>, %arg13: memref<1x1x32xf32, #tpu.memory_space<vmem>>, %arg14: memref<1x1x32xf32, #tpu.memory_space<vmem>>, %arg15: memref<1x8x32xf32, #tpu.memory_space<vmem>>, %arg16: memref<8x32xf32, #tpu.memory_space<vmem>>) attributes {dimension_semantics = [#tpu.dimension_semantics<parallel>, #tpu.dimension_semantics<arbitrary>], iteration_bounds = array<i64: 2, 2>, scalar_prefetch = 0 : i64, scratch_operands = 1 : i64, tpu.core_type = #tpu.core_type<tc>, window_params = [{transform_indices = @transform_0, window_bounds = array<i64: 1, 8, 32>}, {transform_indices = @transform_1, window_bounds = array<i64: 1, 32, 96>}, {transform_indices = @transform_2, window_bounds = array<i64: 1, 1, 96>}, {transform_indices = @transform_3, window_bounds = array<i64: 1, 32, 32>}, {transform_indices = @transform_4, window_bounds = array<i64: 1, 1, 32>}, {transform_indices = @transform_5, window_bounds = array<i64: 1, 1, 32>}, {transform_indices = @transform_6, window_bounds = array<i64: 1, 1, 32>}, {transform_indices = @transform_7, window_bounds = array<i64: 1, 32, 64>}, {transform_indices = @transform_8, window_bounds = array<i64: 1, 1, 64>}, {transform_indices = @transform_9, window_bounds = array<i64: 1, 64, 32>}, {transform_indices = @transform_10, window_bounds = array<i64: 1, 1, 32>}, {transform_indices = @transform_11, window_bounds = array<i64: 1, 1, 32>}, {transform_indices = @transform_12, window_bounds = array<i64: 1, 1, 32>}, {transform_indices = @transform_13, window_bounds = array<i64: 1, 8, 32>}]} {
    %c0_i32 = arith.constant 0 : i32
    %0 = arith.cmpi eq, %arg1, %c0_i32 : i32
    %1 = arith.extui %0 : i1 to i32
    %c0_i32_0 = arith.constant 0 : i32
    %2 = arith.cmpi ne, %1, %c0_i32_0 : i32
    scf.if %2 {
      %c0_59 = arith.constant 0 : index
      %c0_60 = arith.constant 0 : index
      %c0_61 = arith.constant 0 : index
      %123 = vector.load %arg2[%c0_59, %c0_60, %c0_61] : memref<1x8x32xf32, #tpu.memory_space<vmem>>, vector<1x8x32xf32>
      %124 = vector.shape_cast %123 : vector<1x8x32xf32> to vector<8x32xf32>
      %c0_62 = arith.constant 0 : index
      %c0_63 = arith.constant 0 : index
      %125 = vector.load %arg16[%c0_62, %c0_63] : memref<8x32xf32, #tpu.memory_space<vmem>>, vector<8x32xf32>
      tpu.vector_store %arg16[%c0_62, %c0_63], %124 {strides = array<i32>} : memref<8x32xf32, #tpu.memory_space<vmem>>, vector<8x32xf32>,
    } else {
    }
    %c0 = arith.constant 0 : index
    %c0_1 = arith.constant 0 : index
    %3 = vector.load %arg16[%c0, %c0_1] : memref<8x32xf32, #tpu.memory_space<vmem>>, vector<8x32xf32>
    %4 = arith.truncf %3 : vector<8x32xf32> to vector<8x32xbf16>
    %c0_2 = arith.constant 0 : index
    %c0_3 = arith.constant 0 : index
    %c0_4 = arith.constant 0 : index
    %5 = vector.load %arg3[%c0_2, %c0_3, %c0_4] : memref<1x32x96xbf16, #tpu.memory_space<vmem>>, vector<1x32x96xbf16>
    %6 = vector.shape_cast %5 : vector<1x32x96xbf16> to vector<32x96xbf16>
    %cst = arith.constant dense<0.000000e+00> : vector<8x96xf32>
    %7 = tpu.matmul %4, %6, %cst {dimension_numbers = #tpu.dot_dimension_numbers<[1], [0], [0], [1], [0, 0, 1, 1], [], []>} : vector<8x32xbf16>, vector<32x96xbf16>, vector<8x96xf32> -> vector<8x96xf32>
    %c0_5 = arith.constant 0 : index
    %c0_6 = arith.constant 0 : index
    %c0_7 = arith.constant 0 : index
    %8 = vector.load %arg4[%c0_5, %c0_6, %c0_7] : memref<1x1x96xf32, #tpu.memory_space<vmem>>, vector<1x1x96xf32>
    %9 = vector.shape_cast %8 : vector<1x1x96xf32> to vector<1x96xf32>
    %10 = vector.broadcast %9 : vector<1x96xf32> to vector<8x96xf32>
    %11 = arith.addf %7, %10 : vector<8x96xf32>
    %12 = vector.extract_strided_slice %11 {offsets = [0, 0], sizes = [8, 32], strides = [1, 1]} : vector<8x96xf32> to vector<8x32xf32>
    %13 = vector.extract_strided_slice %11 {offsets = [0, 32], sizes = [8, 32], strides = [1, 1]} : vector<8x96xf32> to vector<8x32xf32>
    %14 = vector.extract_strided_slice %11 {offsets = [0, 64], sizes = [8, 32], strides = [1, 1]} : vector<8x96xf32> to vector<8x32xf32>
    %15 = vector.shape_cast %12 : vector<8x32xf32> to vector<1x8x4x8xf32>
    %16 = tpu.transpose %15, [0, 2, 1, 3] : vector<1x8x4x8xf32> -> vector<1x4x8x8xf32>
    %17 = vector.shape_cast %16 : vector<1x4x8x8xf32> to vector<4x8x8xf32>
    %18 = arith.truncf %17 : vector<4x8x8xf32> to vector<4x8x8xbf16>
    %19 = vector.shape_cast %13 : vector<8x32xf32> to vector<1x8x4x8xf32>
    %20 = tpu.transpose %19, [0, 2, 1, 3] : vector<1x8x4x8xf32> -> vector<1x4x8x8xf32>
    %21 = vector.shape_cast %20 : vector<1x4x8x8xf32> to vector<4x8x8xf32>
    %22 = arith.truncf %21 : vector<4x8x8xf32> to vector<4x8x8xbf16>
    %23 = vector.shape_cast %14 : vector<8x32xf32> to vector<1x8x4x8xf32>
    %24 = tpu.transpose %23, [0, 2, 1, 3] : vector<1x8x4x8xf32> -> vector<1x4x8x8xf32>
    %25 = vector.shape_cast %24 : vector<1x4x8x8xf32> to vector<4x8x8xf32>
    %26 = arith.truncf %25 : vector<4x8x8xf32> to vector<4x8x8xbf16>
    "tpu.trace_start"() <{level = 10 : i32, message = "gqd,gkd->gqk"}> : () -> ()
    %cst_8 = arith.constant dense<0.000000e+00> : vector<4x8x8xf32>
    %27 = tpu.matmul %18, %22, %cst_8 {dimension_numbers = #tpu.dot_dimension_numbers<[2], [2], [1], [1], [0, 0, 0, 1, 1, 1], [0], [0]>} : vector<4x8x8xbf16>, vector<4x8x8xbf16>, vector<4x8x8xf32> -> vector<4x8x8xf32>
    "tpu.trace_stop"() : () -> ()
    %cst_9 = arith.constant dense<0xFF800000> : vector<4x8xf32>
    %28 = vector.multi_reduction <maximumf>, %27, %cst_9 [2] : vector<4x8x8xf32> to vector<4x8xf32>
    %29 = vector.shape_cast %28 : vector<4x8xf32> to vector<4x8x1xf32>
    %30 = vector.broadcast %29 : vector<4x8x1xf32> to vector<4x8x8xf32>
    %31 = arith.subf %27, %30 : vector<4x8x8xf32>
    %32 = math.exp %31 : vector<4x8x8xf32>
    %cst_10 = arith.constant dense<0.000000e+00> : vector<4x8xf32>
    %33 = vector.multi_reduction <add>, %32, %cst_10 [2] : vector<4x8x8xf32> to vector<4x8xf32>
    %34 = vector.shape_cast %33 : vector<4x8xf32> to vector<4x8x1xf32>
    %35 = tpu.reciprocal %34 {approx = true} : vector<4x8x1xf32> -> vector<4x8x1xf32>
    %36 = vector.broadcast %35 : vector<4x8x1xf32> to vector<4x8x8xf32>
    %37 = arith.mulf %32, %36 : vector<4x8x8xf32>
    %38 = arith.truncf %37 : vector<4x8x8xf32> to vector<4x8x8xbf16>
    "tpu.trace_start"() <{level = 10 : i32, message = "gqk,gkd->gqd"}> : () -> ()
    %cst_11 = arith.constant dense<0.000000e+00> : vector<4x8x8xf32>
    %39 = tpu.matmul %38, %26, %cst_11 {dimension_numbers = #tpu.dot_dimension_numbers<[2], [1], [1], [2], [0, 0, 0, 1, 1, 2], [0], [0]>} : vector<4x8x8xbf16>, vector<4x8x8xbf16>, vector<4x8x8xf32> -> vector<4x8x8xf32>
    "tpu.trace_stop"() : () -> ()
    %40 = vector.shape_cast %39 : vector<4x8x8xf32> to vector<1x4x8x8xf32>
    %41 = tpu.transpose %40, [0, 2, 1, 3] : vector<1x4x8x8xf32> -> vector<1x8x4x8xf32>
    %42 = vector.shape_cast %41 : vector<1x8x4x8xf32> to vector<8x32xf32>
    %43 = arith.truncf %42 : vector<8x32xf32> to vector<8x32xbf16>
    %c0_12 = arith.constant 0 : index
    %c0_13 = arith.constant 0 : index
    %c0_14 = arith.constant 0 : index
    %44 = vector.load %arg5[%c0_12, %c0_13, %c0_14] : memref<1x32x32xbf16, #tpu.memory_space<vmem>>, vector<1x32x32xbf16>
    %45 = vector.shape_cast %44 : vector<1x32x32xbf16> to vector<32x32xbf16>
    %cst_15 = arith.constant dense<0.000000e+00> : vector<8x32xf32>
    %46 = tpu.matmul %43, %45, %cst_15 {dimension_numbers = #tpu.dot_dimension_numbers<[1], [0], [0], [1], [0, 0, 1, 1], [], []>} : vector<8x32xbf16>, vector<32x32xbf16>, vector<8x32xf32> -> vector<8x32xf32>
    %c0_16 = arith.constant 0 : index
    %c0_17 = arith.constant 0 : index
    %c0_18 = arith.constant 0 : index
    %47 = vector.load %arg6[%c0_16, %c0_17, %c0_18] : memref<1x1x32xf32, #tpu.memory_space<vmem>>, vector<1x1x32xf32>
    %48 = vector.shape_cast %47 : vector<1x1x32xf32> to vector<1x32xf32>
    %49 = vector.broadcast %48 : vector<1x32xf32> to vector<8x32xf32>
    %50 = arith.addf %46, %49 : vector<8x32xf32>
    %51 = arith.addf %3, %50 : vector<8x32xf32>
    %c0_19 = arith.constant 0 : index
    %c0_20 = arith.constant 0 : index
    %c0_21 = arith.constant 0 : index
    %52 = vector.load %arg7[%c0_19, %c0_20, %c0_21] : memref<1x1x32xf32, #tpu.memory_space<vmem>>, vector<1x1x32xf32>
    %53 = vector.shape_cast %52 : vector<1x1x32xf32> to vector<1x32xf32>
    %c0_22 = arith.constant 0 : index
    %c0_23 = arith.constant 0 : index
    %c0_24 = arith.constant 0 : index
    %54 = vector.load %arg8[%c0_22, %c0_23, %c0_24] : memref<1x1x32xf32, #tpu.memory_space<vmem>>, vector<1x1x32xf32>
    %55 = vector.shape_cast %54 : vector<1x1x32xf32> to vector<1x32xf32>
    %cst_25 = arith.constant dense<0.000000e+00> : vector<8xf32>
    %56 = vector.multi_reduction <add>, %51, %cst_25 [1] : vector<8x32xf32> to vector<8xf32>
    %57 = vector.shape_cast %56 : vector<8xf32> to vector<8x1xf32>
    %cst_26 = arith.constant 3.200000e+01 : f32
    %58 = vector.broadcast %cst_26 : f32 to vector<8x1xf32>
    %59 = arith.divf %57, %58 : vector<8x1xf32>
    %60 = vector.broadcast %59 : vector<8x1xf32> to vector<8x32xf32>
    %61 = arith.subf %51, %60 : vector<8x32xf32>
    %62 = arith.mulf %61, %61 : vector<8x32xf32>
    %cst_27 = arith.constant dense<0.000000e+00> : vector<8xf32>
    %63 = vector.multi_reduction <add>, %62, %cst_27 [1] : vector<8x32xf32> to vector<8xf32>
    %64 = vector.shape_cast %63 : vector<8xf32> to vector<8x1xf32>
    %cst_28 = arith.constant 3.200000e+01 : f32
    %65 = vector.broadcast %cst_28 : f32 to vector<8x1xf32>
    %66 = arith.divf %64, %65 : vector<8x1xf32>
    %cst_29 = arith.constant 9.99999974E-6 : f32
    %67 = vector.broadcast %cst_29 : f32 to vector<8x1xf32>
    %68 = arith.addf %66, %67 : vector<8x1xf32>
    %69 = math.rsqrt %68 : vector<8x1xf32>
    %70 = vector.broadcast %69 : vector<8x1xf32> to vector<8x32xf32>
    %71 = arith.mulf %61, %70 : vector<8x32xf32>
    %72 = vector.broadcast %53 : vector<1x32xf32> to vector<8x32xf32>
    %73 = arith.mulf %71, %72 : vector<8x32xf32>
    %74 = vector.broadcast %55 : vector<1x32xf32> to vector<8x32xf32>
    %75 = arith.addf %73, %74 : vector<8x32xf32>
    %76 = arith.truncf %75 : vector<8x32xf32> to vector<8x32xbf16>
    %c0_30 = arith.constant 0 : index
    %c0_31 = arith.constant 0 : index
    %c0_32 = arith.constant 0 : index
    %77 = vector.load %arg9[%c0_30, %c0_31, %c0_32] : memref<1x32x64xbf16, #tpu.memory_space<vmem>>, vector<1x32x64xbf16>
    %78 = vector.shape_cast %77 : vector<1x32x64xbf16> to vector<32x64xbf16>
    %cst_33 = arith.constant dense<0.000000e+00> : vector<8x64xf32>
    %79 = tpu.matmul %76, %78, %cst_33 {dimension_numbers = #tpu.dot_dimension_numbers<[1], [0], [0], [1], [0, 0, 1, 1], [], []>} : vector<8x32xbf16>, vector<32x64xbf16>, vector<8x64xf32> -> vector<8x64xf32>
    %c0_34 = arith.constant 0 : index
    %c0_35 = arith.constant 0 : index
    %c0_36 = arith.constant 0 : index
    %80 = vector.load %arg10[%c0_34, %c0_35, %c0_36] : memref<1x1x64xf32, #tpu.memory_space<vmem>>, vector<1x1x64xf32>
    %81 = vector.shape_cast %80 : vector<1x1x64xf32> to vector<1x64xf32>
    %82 = vector.broadcast %81 : vector<1x64xf32> to vector<8x64xf32>
    %83 = arith.addf %79, %82 : vector<8x64xf32>
    %cst_37 = arith.constant 0.000000e+00 : f32
    %84 = vector.broadcast %cst_37 : f32 to vector<8x64xf32>
    %85 = arith.maximumf %83, %84 : vector<8x64xf32>
    %86 = arith.truncf %85 : vector<8x64xf32> to vector<8x64xbf16>
    %c0_38 = arith.constant 0 : index
    %c0_39 = arith.constant 0 : index
    %c0_40 = arith.constant 0 : index
    %87 = vector.load %arg11[%c0_38, %c0_39, %c0_40] : memref<1x64x32xbf16, #tpu.memory_space<vmem>>, vector<1x64x32xbf16>
    %88 = vector.shape_cast %87 : vector<1x64x32xbf16> to vector<64x32xbf16>
    %cst_41 = arith.constant dense<0.000000e+00> : vector<8x32xf32>
    %89 = tpu.matmul %86, %88, %cst_41 {dimension_numbers = #tpu.dot_dimension_numbers<[1], [0], [0], [1], [0, 0, 1, 1], [], []>} : vector<8x64xbf16>, vector<64x32xbf16>, vector<8x32xf32> -> vector<8x32xf32>
    %c0_42 = arith.constant 0 : index
    %c0_43 = arith.constant 0 : index
    %c0_44 = arith.constant 0 : index
    %90 = vector.load %arg12[%c0_42, %c0_43, %c0_44] : memref<1x1x32xf32, #tpu.memory_space<vmem>>, vector<1x1x32xf32>
    %91 = vector.shape_cast %90 : vector<1x1x32xf32> to vector<1x32xf32>
    %92 = vector.broadcast %91 : vector<1x32xf32> to vector<8x32xf32>
    %93 = arith.addf %89, %92 : vector<8x32xf32>
    %94 = arith.addf %75, %93 : vector<8x32xf32>
    %c0_45 = arith.constant 0 : index
    %c0_46 = arith.constant 0 : index
    %c0_47 = arith.constant 0 : index
    %95 = vector.load %arg13[%c0_45, %c0_46, %c0_47] : memref<1x1x32xf32, #tpu.memory_space<vmem>>, vector<1x1x32xf32>
    %96 = vector.shape_cast %95 : vector<1x1x32xf32> to vector<1x32xf32>
    %c0_48 = arith.constant 0 : index
    %c0_49 = arith.constant 0 : index
    %c0_50 = arith.constant 0 : index
    %97 = vector.load %arg14[%c0_48, %c0_49, %c0_50] : memref<1x1x32xf32, #tpu.memory_space<vmem>>, vector<1x1x32xf32>
    %98 = vector.shape_cast %97 : vector<1x1x32xf32> to vector<1x32xf32>
    %cst_51 = arith.constant dense<0.000000e+00> : vector<8xf32>
    %99 = vector.multi_reduction <add>, %94, %cst_51 [1] : vector<8x32xf32> to vector<8xf32>
    %100 = vector.shape_cast %99 : vector<8xf32> to vector<8x1xf32>
    %cst_52 = arith.constant 3.200000e+01 : f32
    %101 = vector.broadcast %cst_52 : f32 to vector<8x1xf32>
    %102 = arith.divf %100, %101 : vector<8x1xf32>
    %103 = vector.broadcast %102 : vector<8x1xf32> to vector<8x32xf32>
    %104 = arith.subf %94, %103 : vector<8x32xf32>
    %105 = arith.mulf %104, %104 : vector<8x32xf32>
    %cst_53 = arith.constant dense<0.000000e+00> : vector<8xf32>
    %106 = vector.multi_reduction <add>, %105, %cst_53 [1] : vector<8x32xf32> to vector<8xf32>
    %107 = vector.shape_cast %106 : vector<8xf32> to vector<8x1xf32>
    %cst_54 = arith.constant 3.200000e+01 : f32
    %108 = vector.broadcast %cst_54 : f32 to vector<8x1xf32>
    %109 = arith.divf %107, %108 : vector<8x1xf32>
    %cst_55 = arith.constant 9.99999974E-6 : f32
    %110 = vector.broadcast %cst_55 : f32 to vector<8x1xf32>
    %111 = arith.addf %109, %110 : vector<8x1xf32>
    %112 = math.rsqrt %111 : vector<8x1xf32>
    %113 = vector.broadcast %112 : vector<8x1xf32> to vector<8x32xf32>
    %114 = arith.mulf %104, %113 : vector<8x32xf32>
    %115 = vector.broadcast %96 : vector<1x32xf32> to vector<8x32xf32>
    %116 = arith.mulf %114, %115 : vector<8x32xf32>
    %117 = vector.broadcast %98 : vector<1x32xf32> to vector<8x32xf32>
    %118 = arith.addf %116, %117 : vector<8x32xf32>
    %c0_56 = arith.constant 0 : index
    %c0_57 = arith.constant 0 : index
    %119 = vector.load %arg16[%c0_56, %c0_57] : memref<8x32xf32, #tpu.memory_space<vmem>>, vector<8x32xf32>
    tpu.vector_store %arg16[%c0_56, %c0_57], %118 {strides = array<i32>} : memref<8x32xf32, #tpu.memory_space<vmem>>, vector<8x32xf32>,
    %c1_i32 = arith.constant 1 : i32
    %120 = arith.cmpi eq, %arg1, %c1_i32 : i32
    %121 = arith.extui %120 : i1 to i32
    %c0_i32_58 = arith.constant 0 : i32
    %122 = arith.cmpi ne, %121, %c0_i32_58 : i32
    scf.if %122 {
      %123 = vector.shape_cast %118 : vector<8x32xf32> to vector<1x8x32xf32>
      %c0_59 = arith.constant 0 : index
      %c0_60 = arith.constant 0 : index
      %c0_61 = arith.constant 0 : index
      %124 = vector.load %arg15[%c0_59, %c0_60, %c0_61] : memref<1x8x32xf32, #tpu.memory_space<vmem>>, vector<1x8x32xf32>
      tpu.vector_store %arg15[%c0_59, %c0_60, %c0_61], %123 {strides = array<i32>} : memref<1x8x32xf32, #tpu.memory_space<vmem>>, vector<1x8x32xf32>,
    } else {
    }
    return
  }
  func.func @transform_0(%arg0: i32, %arg1: i32) -> (i32, i32, i32) {
    %c0_i32 = arith.constant 0 : i32
    %c0_i32_0 = arith.constant 0 : i32
    %c0_i32_1 = arith.constant 0 : i32
    return %arg0, %c0_i32, %c0_i32_0 : i32, i32, i32
  }
  func.func @transform_1(%arg0: i32, %arg1: i32) -> (i32, i32, i32) {
    %c0_i32 = arith.constant 0 : i32
    %c0_i32_0 = arith.constant 0 : i32
    %c0_i32_1 = arith.constant 0 : i32
    return %arg1, %c0_i32, %c0_i32_0 : i32, i32, i32
  }
  func.func @transform_2(%arg0: i32, %arg1: i32) -> (i32, i32, i32) {
    %c0_i32 = arith.constant 0 : i32
    %c0_i32_0 = arith.constant 0 : i32
    %c0_i32_1 = arith.constant 0 : i32
    return %arg1, %c0_i32, %c0_i32_0 : i32, i32, i32
  }
  func.func @transform_3(%arg0: i32, %arg1: i32) -> (i32, i32, i32) {
    %c0_i32 = arith.constant 0 : i32
    %c0_i32_0 = arith.constant 0 : i32
    %c0_i32_1 = arith.constant 0 : i32
    return %arg1, %c0_i32, %c0_i32_0 : i32, i32, i32
  }
  func.func @transform_4(%arg0: i32, %arg1: i32) -> (i32, i32, i32) {
    %c0_i32 = arith.constant 0 : i32
    %c0_i32_0 = arith.constant 0 : i32
    %c0_i32_1 = arith.constant 0 : i32
    return %arg1, %c0_i32, %c0_i32_0 : i32, i32, i32
  }
  func.func @transform_5(%arg0: i32, %arg1: i32) -> (i32, i32, i32) {
    %c0_i32 = arith.constant 0 : i32
    %c0_i32_0 = arith.constant 0 : i32
    %c0_i32_1 = arith.constant 0 : i32
    return %arg1, %c0_i32, %c0_i32_0 : i32, i32, i32
  }
  func.func @transform_6(%arg0: i32, %arg1: i32) -> (i32, i32, i32) {
    %c0_i32 = arith.constant 0 : i32
    %c0_i32_0 = arith.constant 0 : i32
    %c0_i32_1 = arith.constant 0 : i32
    return %arg1, %c0_i32, %c0_i32_0 : i32, i32, i32
  }
  func.func @transform_7(%arg0: i32, %arg1: i32) -> (i32, i32, i32) {
    %c0_i32 = arith.constant 0 : i32
    %c0_i32_0 = arith.constant 0 : i32
    %c0_i32_1 = arith.constant 0 : i32
    return %arg1, %c0_i32, %c0_i32_0 : i32, i32, i32
  }
  func.func @transform_8(%arg0: i32, %arg1: i32) -> (i32, i32, i32) {
    %c0_i32 = arith.constant 0 : i32
    %c0_i32_0 = arith.constant 0 : i32
    %c0_i32_1 = arith.constant 0 : i32
    return %arg1, %c0_i32, %c0_i32_0 : i32, i32, i32
  }
  func.func @transform_9(%arg0: i32, %arg1: i32) -> (i32, i32, i32) {
    %c0_i32 = arith.constant 0 : i32
    %c0_i32_0 = arith.constant 0 : i32
    %c0_i32_1 = arith.constant 0 : i32
    return %arg1, %c0_i32, %c0_i32_0 : i32, i32, i32
  }
  func.func @transform_10(%arg0: i32, %arg1: i32) -> (i32, i32, i32) {
    %c0_i32 = arith.constant 0 : i32
    %c0_i32_0 = arith.constant 0 : i32
    %c0_i32_1 = arith.constant 0 : i32
    return %arg1, %c0_i32, %c0_i32_0 : i32, i32, i32
  }
  func.func @transform_11(%arg0: i32, %arg1: i32) -> (i32, i32, i32) {
    %c0_i32 = arith.constant 0 : i32
    %c0_i32_0 = arith.constant 0 : i32
    %c0_i32_1 = arith.constant 0 : i32
    return %arg1, %c0_i32, %c0_i32_0 : i32, i32, i32
  }
  func.func @transform_12(%arg0: i32, %arg1: i32) -> (i32, i32, i32) {
    %c0_i32 = arith.constant 0 : i32
    %c0_i32_0 = arith.constant 0 : i32
    %c0_i32_1 = arith.constant 0 : i32
    return %arg1, %c0_i32, %c0_i32_0 : i32, i32, i32
  }
  func.func @transform_13(%arg0: i32, %arg1: i32) -> (i32, i32, i32) {
    %c0_i32 = arith.constant 0 : i32
    %c0_i32_0 = arith.constant 0 : i32
    %c0_i32_1 = arith.constant 0 : i32
    return %arg0, %c0_i32, %c0_i32_0 : i32, i32, i32
  }
}

</mosaic_0001>

<bundles_post_ra>
// kernel: tpu_custom_call.1
= control target key start
LH: loop header
LB: loop body
LE: loop exit
PB: predicated region body
PF: predicated region fallthrough
CT: control target
= control target key end

     0   :  { %s3100_s0 = inlined_call_operand.hbm [shape: f32[2,8,32], index: 0, kind: input, shape index: {}]   ;;  %s3101_s1 = inlined_call_operand.vmem [shape: bf16[2,32,96], index: 1, kind: input, shape index: {}]   ;;  %s3102_s2 = inlined_call_operand.hbm [shape: f32[2,1,96], index: 2, kind: input, shape index: {}]   ;;  %s3103_s3 = inlined_call_operand.vmem [shape: bf16[2,32,32], index: 3, kind: input, shape index: {}]   ;;  %s3104_s4 = inlined_call_operand.vmem [shape: f32[2,1,32], index: 4, kind: input, shape index: {}]   ;;  %s3105_s5 = inlined_call_operand.hbm [shape: f32[2,1,32], index: 5, kind: input, shape index: {}]   ;;  %s3106_s6 = inlined_call_operand.vmem [shape: f32[2,1,32], index: 6, kind: input, shape index: {}]   ;;  %s3107_s7 = inlined_call_operand.vmem [shape: bf16[2,32,64], index: 7, kind: input, shape index: {}]   ;;  %s3108_s8 = inlined_call_operand.vmem [shape: f32[2,1,64], index: 8, kind: input, shape index: {}]   ;;  %s3109_s9 = inlined_call_operand.vmem [shape: bf16[2,64,32], index: 9, kind: input, shape index: {}]   ;;  %s3110_s10 = inlined_call_operand.vmem [shape: f32[2,1,32], index: 10, kind: input, shape index: {}]   ;;  %s3111_s11 = inlined_call_operand.hbm [shape: f32[2,1,32], index: 11, kind: input, shape index: {}]   ;;  %s3112_s12 = inlined_call_operand.vmem [shape: f32[2,1,32], index: 12, kind: input, shape index: {}]   ;;  %s3113_s13 = inlined_call_operand.hbm [shape: f32[2,8,32], index: 13, kind: output, shape index: {}]  }
   0x1   :  { %3127 = sst [smem:[#allocation29_spill]] %s3100_s0 }
   0x2   :  { %3128 = sst [smem:[#allocation30_spill]] %s3101_s1 }
   0x3   :  { %3129 = sst [smem:[#allocation31_spill]] %s3102_s2 }
   0x4   :  { %3130 = sst [smem:[#allocation32_spill]] %s3103_s3 }
   0x5   :  { %3131 = sst [smem:[#allocation33_spill]] %s3105_s5 }
   0x6   :  { %3132 = sst [smem:[#allocation34_spill]] %s3106_s6 }
   0x7   :  { %3133 = sst [smem:[#allocation35_spill]] %s3107_s7 }
   0x8   :  { %3134 = sst [smem:[#allocation36_spill]] %s3108_s8 }
   0x9   :  { %3135 = sst [smem:[#allocation37_spill]] %s3109_s9 }
   0xa   :  { %3136 = sst [smem:[#allocation38_spill]] %s3110_s10 }
   0xb   :  { %3137 = sst [smem:[#allocation39_spill]] %s3111_s11 }
   0xc   :  { %3138 = sst [smem:[#allocation40_spill]] %s3112_s12 }
   0xd   :  { %3139 = sst [smem:[#allocation41_spill]] %s3113_s13 }
   0xe   :  { %18 = vsyncpa [#allocation4], 0 }
   0xf   :  { %20 = vsyncpa [#allocation4 + $0x1], 0 }
  0x10   :  { %21 = vsyncpa [#allocation7], 0 }
  0x11   :  { %23 = vsyncpa [#allocation7 + $0x1], 0 }
  0x12   :  { %24 = vsyncpa [#allocation10], 0 }
  0x13   :  { %26 = vsyncpa [#allocation10 + $0x1], 0 }
  0x14   :  { %27 = vsyncpa [#allocation5], 0 }
  0x15   :  { %29 = vsyncpa [#allocation5 + $0x1], 0  ;;  %s2527_s25 = smov 0   ;;  %s2529_s26 = smov 0  }
  0x16   :  { %s2531_s27 = smov 0   ;;  %s2533_s28 = smov 0  }
  0x17   :  { %s2535_s29 = smov 0   ;;  %s2537_s30 = smov 0  }
  0x18   :  { %s2539_s14 = smov 0   ;;  %s2541_s15 = smov 0  }
  0x19   :  { %s2543_s16 = smov 0   ;;  %s2545_s17 = smov 0  }
  0x1a   :  { %s2547_s18 = smov 0  }
  0x1b LB: > { %3140 = sst [smem:[#allocation16_spill]] %s2412_s27  ;;  %s2581_s19 = sadd.s32 4294967295, %s2444_s18   ;;  %s2444_s18 = sphi %s2547_s18, %s35_s18   ;;  %s2440_s17 = sphi %s2545_s17, %s3197_s17   ;;  %s2436_s16 = sphi %s2543_s16, %s3196_s16   ;;  %s2432_s15 = sphi %s2541_s15, %s3195_s15   ;;  %s2428_s14 = sphi %s2539_s14, %s3194_s14   ;;  %s2424_s30 = sphi %s2537_s30, %s3193_s30   ;;  %s2420_s29 = sphi %s2535_s29, %s3192_s29   ;;  %s2416_s28 = sphi %s2533_s28, %s3191_s28   ;;  %s2412_s27 = sphi %s2531_s27, %s3190_s27   ;;  %s2408_s26 = sphi %s2529_s26, %s3199_s26   ;;  %s2404_s25 = sphi %s2527_s25, %s3198_s25  }
  0x1c   : > { %3141 = sst [smem:[#allocation17_spill]] %s2416_s28  ;;  %s44_s20 = sadd.s32 1, %s2436_s16 }
  0x1d   : > { %3142 = sst [smem:[#allocation18_spill]] %s2420_s29  ;;  %p2584_p0 = scmp.ge.s32.totalorder %s44_s20, 2 }
  0x1e   : > { %3143 = sst [smem:[#allocation19_spill]] %s2424_s30  ;;  %p62_p1 = scmp.eq.s32.totalorder %s2444_s18, 0 }
  0x1f   : > { %3144 = sst [smem:[#allocation20_spill]] %s2432_s15  ;;  %p68_p2 = scmp.eq.s32.totalorder %s2581_s19, 0 }
  0x20   : > { %3145 = sst [smem:[#allocation21_spill]] %s2436_s16  ;;  %s106_s22 = sadd.s32 1, %s2412_s27 }
  0x21   : > { %3146 = sst [smem:[#allocation22_spill]] %s2440_s17  ;;  %s3201_s20 = smov (%p2584_p0, %s44_s20), 0 }
  0x22   : > { %3148 = sst [smem:[#allocation23_spill]] %s3201_s20  ;;  %p113_p3 = scmp.ne.s32.totalorder %s2412_s27, %s2408_s26 }
  0x23   : > { %p119_p4 = scmp.ne.s32.totalorder %s2408_s26, %s2404_s25  ;;  %s103_s23 = ssub.s32 %s2436_s16, %s3201_s20 }
  0x24   : > { %p104_p5 = scmp.eq.s32.totalorder %s103_s23, 0  ;;  %p115_p6 = por %p113_p3, %p62_p1 }
  0x25   : > { %p2604_p7 = por %p119_p4, %p68_p2  ;;  %p2043_p8 = scmp.lt.s32.totalorder %s2444_s18, 4 }
  0x26   : > { %s2610_s13 = scalar_select %p104_p5, %s2412_s27, %s106_s22  }
  0x27   : > { %s456_s15 = sand.u32 1, %s2444_s18   ;;  %s2614_s25 = sand.u32 1, %s2412_s27  }
  0x28   : > { %3150 = sst [smem:[#allocation24_spill]] %s2610_s13  ;;  %s459_s10 = scalar_lea.vmem [#allocation6], %s2614_s25 }
  0x29   : > { %s3151_s2 = sld [smem:[#allocation31_spill]]  ;;  %s466_s9 = sshll.u32 %s459_s10, 4  ;;  %s467_s9 = int_to_ptr.vmem [resolvable:$true] %s466_s9 }
  0x2a   : > { %p2623_p9 = pnand %p2043_p8, %p115_p6  ;;  %p1933_p10 = scmp.ge.s32.totalorder %s2444_s18, 1 }
  0x2b   : > { %p559_p11 = scmp.lt.s32.totalorder %s2444_s18, 5  ;;  %s2629_s12 = scalar_lea.sflag [#allocation7], %s456_s15 }
  0x2c   : > { %s1928_s20 = sadd.s32 4294967294, %s2444_s18   ;;  %p61_p13 = scmp.ne.s32.totalorder %s2424_s30, %s2420_s29 }
  0x2d   : > { %p2634_p12 = pnand %p1933_p10, %p559_p11  ;;  %p67_p4 = scmp.ne.s32.totalorder %s2420_s29, %s2416_s28 }
  0x2e   : > { %p2650_p5 = por %p62_p1, %p61_p13  ;;  %p403_p6 = scmp.eq.s32.totalorder %s2581_s19, 3 }
  0x2f   : > { %s462_s23 = scalar_lea.hbm %s3151_s2, %s2436_s16  ;;  %s54_s2 = sadd.s32 1, %s2424_s30 }
  0x30   : > { %s464_s22 = sshll.u32 %s462_s23, 4  ;;  %s47_s23 = sadd.s32 1, %s2440_s17  ;;  %s465_s22 = int_to_ptr.hbm [resolvable:$true] %s464_s22 }
  0x31   : > { %2032 = dma.hbm_to_vmem [thread:$0]  (!%p2623_p9), %s465_s22, 16, %s467_s9, %s2629_s12  }
  0x32   : > { %s3203_s23 = smov (!%p2584_p0, %s47_s23), %s2440_s17  ;;  %p2659_p10 = por %p68_p2, %p67_p4 }
  0x33   : > { %p49_p3 = scmp.ge.s32.totalorder %s3203_s23, 2  ;;  %p2663_p0 = por %p403_p6, %p61_p13 }
  0x34   : > { %p409_p1 = scmp.eq.s32.totalorder %s1928_s20, 3  ;;  %s429_s27 = sand.u32 1, %s2424_s30  }
  0x35   : > { %s3205_s23 = smov (%p49_p3, %s3203_s23), 0  ;;  %s1931_s7 = sshll.u32 %s429_s27, 3 }
  0x36   : > { %3155 = sst [smem:[#allocation25_spill]] %s3205_s23  ;;  %s51_s22 = ssub.s32 %s2440_s17, %s3205_s23 }
  0x37   : > { %s3157_s21 = scalar_select %p2663_p0, 1, 0 }
  0x38   : > { %p52_p11 = scmp.eq.s32.totalorder %s51_s22, 0  ;;  %p2670_p3 = por %p409_p1, %p67_p4 }
  0x39   : > { %3158 = sst [smem:[#allocation26_spill]] %s3157_s21  ;;  %s1932_s6 = sshll.u32 %s2440_s17, 3 }
  0x3a   : > { %s3159_s28 = scalar_select %p2670_p3, 1, 0 }
  0x3b   : > { %s2675_s8 = scalar_select %p52_p11, %s2424_s30, %s54_s2  }
  0x3c   : > { %3160 = sst [smem:[#allocation27_spill]] %s3159_s28  ;;  %s433_s20 = scalar_lea.vmem [#allocation3], %s1931_s7 }
  0x3d   : > { %3161 = sst [smem:[#allocation28_spill]] %s2675_s8  ;;  %s441_s22 = sshll.u32 %s433_s20, 4  ;;  %s442_s22 = int_to_ptr.vmem [resolvable:$true] %s441_s22 }
  0x3e   : > { %s3162_s0 = sld [smem:[#allocation29_spill]]  ;;  %p2027_p2 = pnand %p2043_p8, %p2650_p5 }
  0x3f   : > { %s3163_s5 = sld [smem:[#allocation33_spill]]  ;;  %s490_s1 = scalar_lea.vmem [#allocation8], %s2614_s25 }
  0x40   : > { %s497_s3 = sshll.u32 %s490_s1, 4  ;;  %s3164_s11 = sld [smem:[#allocation39_spill]]  ;;  %s498_s3 = int_to_ptr.vmem [resolvable:$true] %s497_s3 }
  0x41   : > { %s541_s20 = scalar_lea.vmem [#allocation9], %s2614_s25  ;;  %s539_s8 = scalar_lea.sflag [#allocation10], %s2614_s25 }
  0x44   : > { %s437_s21 = scalar_lea.hbm %s3162_s0, %s1932_s6  ;;  %s430_s6 = scalar_lea.sflag [#allocation4], %s429_s27 }
  0x45   : > { %s439_s23 = sshll.u32 %s437_s21, 4  ;;  %s493_s17 = scalar_lea.hbm %s3163_s5, %s2436_s16  ;;  %s440_s23 = int_to_ptr.hbm [resolvable:$true] %s439_s23 }
  0x46   : > { %s495_s30 = sshll.u32 %s493_s17, 4  ;;  %s544_s15 = scalar_lea.hbm %s3164_s11, %s2436_s16  ;;  %s496_s30 = int_to_ptr.hbm [resolvable:$true] %s495_s30 }
  0x47   : > { %2029 = dma.hbm_to_vmem [thread:$0]  (!%p2027_p2), %s440_s23, 128, %s442_s22, %s430_s6  }
  0x48   : > { %2035 = dma.hbm_to_vmem [thread:$0]  (!%p2623_p9), %s496_s30, 16, %s498_s3, %s2629_s12  }
  0x49   : > { %s548_s0 = sshll.u32 %s541_s20, 4  ;;  %s546_s28 = sshll.u32 %s544_s15, 4  ;;  %s549_s0 = int_to_ptr.vmem [resolvable:$true] %s548_s0  ;;  %s547_s28 = int_to_ptr.hbm [resolvable:$true] %s546_s28 }
  0x4a   : > { %2038 = dma.hbm_to_vmem [thread:$0]  (!%p2623_p9), %s547_s28, 16, %s549_s0, %s539_s8  }
  0x4b   : > { %563 = sbr.rel (%p2634_p12) target bundleno = 2147 (0x863), region = 72  ;;  %s2704_s27 = sand.u32 (!%p2634_p12), 1, %s2420_s29  }
  0x4c   : > { %s3124_s30 = sshll.u32 (!%p2634_p12), %s2704_s27, 3  ;;  %s566_s17 = scalar_lea.sflag (!%p2634_p12), [#allocation4], %s2704_s27 }
  0x4d   : > { %s569_s12 = scalar_lea.vmem (!%p2634_p12), [#allocation3], %s3124_s30 }
  0x50   : > { %2387 = dma.done.wait (%p2659_p10), %s566_s17, 128  }
  0x51   : > { %2389 = vsyncadd (%p2659_p10), %s566_s17, 4294967168  ;;  %s575_s0 = sand.u32 1, %s2581_s19   ;;  %s2716_s13 = sand.u32 1, %s2408_s26  }
  0x52   : > { %s576_s28 = scalar_lea.sflag [#allocation7], %s575_s0 }
  0x53   : > { %2391 = dma.done.wait (%p2604_p7), %s576_s28, 32  }
  0x54   : > { %2393 = vsyncadd (%p2604_p7), %s576_s28, 4294967264  ;;  %s594_s23 = scalar_lea.sflag [#allocation10], %s2716_s13 }
  0x55   : > { %2395 = dma.done.wait (%p2604_p7), %s594_s23, 16  }
  0x56   : > { %2397 = vsyncadd (%p2604_p7), %s594_s23, 4294967280  ;;  %p687_p8 = scmp.lt.s32.totalorder %s2428_s14, 1  ;;  %s3165_s7 = sld [smem:[#allocation30_spill]] }
  0x57   : > { %s3166_s8 = sld [smem:[#allocation32_spill]]  ;;  %p1944_p7 = scmp.ne.s32.totalorder %s2428_s14, 0 }
  0x58   : > { %s2732_s19 = scalar_select %p687_p8, %s2428_s14, 1 }
  0x59   : > { %s3168_s30 = sld [smem:[#allocation35_spill]] }
  0x5a   : > { %s2002_s22 = sshll.u32 %s2732_s19, 4  ;;  %s3169_s3 = sld [smem:[#allocation36_spill]] }
  0x5b   : > { %s2005_s24 = sshll.u32 %s2732_s19, 5  ;;  %s3170_s16 = sld [smem:[#allocation37_spill]] }
  0x5c   : > { %s691_s21 = scalar_lea.vmem %s3165_s7, %s2002_s22  ;;  %s3171_s29 = sld [smem:[#allocation38_spill]] }
  0x5d   : > { %s2745_s17 = scalar_lea.vmem %s3166_s8, %s2002_s22  ;;  %s3172_s9 = sld [smem:[#allocation40_spill]] }
  0x5f   : > { %s2754_s5 = scalar_lea.vmem %s3168_s30, %s2002_s22  ;;  %s3173_s30 = sshll.u32 %s2704_s27, 3 }
  0x60   : > { %s710_s11 = scalar_lea.vmem %s3169_s3, %s2732_s19  ;;  %s2776_s10 = scalar_lea.vmem [#allocation11], %s3173_s30 }
  0x61   : > { %s2764_s15 = scalar_lea.vmem %s3170_s16, %s2005_s24  ;;  %726 = sbr.rel (%p1944_p7) target bundleno = 104 (0x68), region = 92 }
  0x62   : > { %s718_s0 = scalar_lea.vmem %s3171_s29, %s2732_s19 }
  0x63   : > { %s721_s25 = scalar_lea.vmem %s3172_s9, %s2732_s19 }
  0x66   : > { %v727_v0 = vld [vmem:[%s569_s12] sm:$0xff]  ;;  %vm728_vm0 = vcmask 261120  }
  0x67   : > { %729 = vst.msk [vmem:[#allocation2] sm:$0xff] %vm728_vm0, %v727_v0 }
  0x68 PF: > { %v2007_v1 = vld [vmem:[%s691_s21 + $0x8] sm:$0xff]  ;;  %v2006_v2 = vld [vmem:[%s691_s21] sm:$0xff]  ;;  %vm752_vm1 = vcmask 261120   ;;  %s3174_s29 = scalar_lea.vmem [#allocation6], %s2716_s13  ;;  %s2446_s16 = smov 104   ;;  %vm780_vm2 = vcmask 1047556  }
  0x69   : > { %762 = vmatpush.bf16.msra.mxu0 %v2007_v1  ;;  %v2164_v5 = vld [vmem:[%s3174_s29] ss:$0 sm:$0xff]  ;;  %s2447_s12 = smov 120   ;;  %s2448_s9 = smov 112   ;;  %v2450_v15 = vmov 1983009808  }
  0x6a   : > { %s2449_s22 = smov 96   ;;  %v785_v16 = vunpack.c.l.s4 %v2450_v15  ;;  %v2451_v29 = vmov 1934713408   ;;  %vm1146_vm3 = vcmask 64512   ;;  %s2452_s3 = smov 64   ;;  %vm1274_vm4 = vcmask 1043456  }
  0x6b   : > { %v809_v30 = vunpack.c.l.s4 %v2451_v29  ;;  %s2453_s21 = smov 16   ;;  %s2454_s2 = smov 8   ;;  %vm1471_vm5 = vcmask 130048   ;;  %vm1473_vm6 = vcmask 195584   ;;  %vm1627_vm11 = vcmask 523264  }
  0x6c   : > { %v2794_v20 = vunpack.c.0.s8 %v785_v16  ;;  %s2455_s1 = smov 24   ;;  %s3175_s7 = scalar_lea.vmem %s3104_s4, %s2732_s19 }
  0x6d   : > { %763 = vmatpush.bf16.msra.mxu0 %v2006_v2  ;;  %v2804_v35 = vunpack.c.0.s8 %v809_v30  ;;  %s3177_s8 = sld [smem:[#allocation34_spill]]  ;;  %p1997_p9 = scmp.ne.s32.totalorder %s2428_s14, 1 }
  0x6e   : > { %v2779_v3 = vld [vmem:[#allocation2] sm:$0xff] }
  0x6f   : > { %v731_v4 = vpack.c.bf16 %v2779_v3, %v2779_v3 }
  0x71   : > { %1953 = vmatmul.msk.bf16.vlgmr.msra.gmra.mxu0 %vm752_vm1, %v731_v4 }
  0x73   : > { %s3178_s28 = scalar_lea.vmem %s3177_s8, %s2732_s19 }
  0xee   : > { %v765_v6 = vpop.f32.mrf.mxu0 }
  0xef   : > { %v766_v7 = vadd.f32 %v2164_v5, %v765_v6 }
  0xf1   : > { %776 = vrot.lane.b32.xlu1 %v766_v7, %s2446_s16  ;;  %770 = vrot.lane.b32.xlu0 %v766_v7, %s2447_s12  ;;  %v782_v17 = vrot.slane %v766_v7, 4 }
  0xf6   : > { %v767_v8 = vpop.f32.mrf.mxu0 }
  0xf9   : > { %773 = vrot.lane.b32.xlu0 %v766_v7, %s2448_s9 }
 0x163   : > { %v771_v9 = vpop.permute.xlu0 %770  ;;  %v777_v11 = vpop.permute.xlu1 %776 }
 0x164   : > { %v2786_v10 = vpack.i.bf16 %v771_v9, %v766_v7  ;;  %v792_v21 = vrot.slane %v777_v11, 4  ;;  %v794_v22 = vrot.slane %v771_v9, 4 }
 0x166   : > { %2145 = vrot.lane.b32.xlu1 %v2786_v10, %s2449_s22  ;;  %v793_v25 = vsel %vm780_vm2, %v792_v21, %v771_v9  ;;  %v795_v26 = vsel %vm780_vm2, %v777_v11, %v794_v22 }
 0x167   : > { %v799_v31 = vperm.slane %v793_v25, %v2794_v20  ;;  %v803_v32 = vperm.slane %v795_v26, %v2794_v20 }
 0x169   : > { %v804_v36 = vrot.slane %v799_v31, 4  ;;  %v816_v37 = vrot.slane %v803_v32, 4 }
 0x16b   : > { %v774_v12 = vpop.permute.xlu0 %773 }
 0x16c   : > { %v2789_v13 = vpack.i.bf16 %v777_v11, %v774_v12  ;;  %v779_v14 = vrot.slane %v774_v12, 4  ;;  %v783_v19 = vsel %vm780_vm2, %v774_v12, %v782_v17 }
 0x16d   : > { %v791_v24 = vperm.slane %v783_v19, %v2794_v20 }
 0x16e   : > { %2150 = vrot.lane.b32.xlu2 %v2789_v13, %s2449_s22  ;;  %v781_v18 = vsel %vm780_vm2, %v779_v14, %v766_v7 }
 0x16f   : > { %v787_v23 = vperm.slane %v781_v18, %v2794_v20  ;;  %v818_v28 = vrot.slane %v791_v24, 4  ;;  %v817_v42 = vsel %vm780_vm2, %v816_v37, %v791_v24 }
 0x170   : > { %v823_v46 = vperm.slane %v817_v42, %v2804_v35 }
 0x171   : > { %v806_v27 = vrot.slane %v787_v23, 4  ;;  %v819_v34 = vsel %vm780_vm2, %v803_v32, %v818_v28  ;;  %v805_v41 = vsel %vm780_vm2, %v804_v36, %v787_v23 }
 0x172   : > { %v827_v39 = vperm.slane %v819_v34, %v2804_v35  ;;  %v811_v45 = vperm.slane %v805_v41, %v2804_v35  ;;  %v832_v56 = vrot.slane %v823_v46, 4 }
 0x173   : > { %v807_v33 = vsel %vm780_vm2, %v799_v31, %v806_v27 }
 0x174   : > { %v815_v38 = vperm.slane %v807_v33, %v2804_v35  ;;  %v834_v48 = vrot.slane %v827_v39, 4  ;;  %v828_v54 = vrot.slane %v811_v45, 4  ;;  %v833_v12 = vsel %vm780_vm2, 0.0, %v832_v56 }
 0x176   : > { %v830_v47 = vrot.slane %v815_v38, 4  ;;  %v835_v57 = vsel %vm780_vm2, 0.0, %v834_v48  ;;  %v847_v62 = vsel %vm780_vm2, %v834_v48, %v823_v46  ;;  %v829_v11 = vsel %vm780_vm2, 0.0, %v828_v54 }
 0x177   : > { %v852_v2 = vrot.slane %v835_v57, 4  ;;  %v851_v19 = vperm.slane %v847_v62, %v2794_v20 }
 0x178   : > { %v831_v55 = vsel %vm780_vm2, 0.0, %v830_v47  ;;  %v836_v14 = vsel %vm780_vm2, %v830_v47, %v811_v45 }
 0x179   : > { %v841_v1 = vrot.slane %v831_v55, 4  ;;  %v853_v24 = vsel %vm780_vm2, %v852_v2, %v833_v12  ;;  %v840_v27 = vperm.slane %v836_v14, %v2794_v20  ;;  %v872_v41 = vrot.slane %v851_v19, 4 }
 0x17a   : > { %v857_v37 = vperm.slane %v853_v24, %v2794_v20 }
 0x17b   : > { %v842_v23 = vsel %vm780_vm2, %v841_v1, %v829_v11 }
 0x17c   : > { %v846_v32 = vperm.slane %v842_v23, %v2794_v20 }
 0x1c8   : > { %v2151_v40 = vpop.permute.xlu2 %2150 }
 0x1c9   : > { %v2153_v43 = vunpack.i.h.bf16 %v2151_v40  ;;  %v2152_v44 = vunpack.i.l.bf16 %v2151_v40  ;;  %v860_v40 = vrot.slane %v840_v27, 4 }
 0x1cb   : > { %v918_v50 = vrot.slane %v2153_v43, 4  ;;  %v906_v51 = vrot.slane %v2152_v44, 4 }
 0x1d8   : > { %v2146_v49 = vpop.permute.xlu1 %2145 }
 0x1d9   : > { %v2148_v52 = vunpack.i.h.bf16 %v2146_v49  ;;  %v2147_v53 = vunpack.i.l.bf16 %v2146_v49  ;;  %v858_v49 = vrot.slane %v846_v32, 4 }
 0x1db   : > { %v920_v58 = vrot.slane %v2148_v52, 4  ;;  %v907_v59 = vsel %vm780_vm2, %v906_v51, %v2147_v53  ;;  %v908_v60 = vrot.slane %v2147_v53, 4  ;;  %v919_v61 = vsel %vm780_vm2, %v918_v50, %v2148_v52 }
 0x1dc   : > { %v913_v63 = vperm.slane %v907_v59, %v2794_v20  ;;  %v925_v0 = vperm.slane %v919_v61, %v2794_v20  ;;  %v870_v53 = vrot.slane %v857_v37, 4  ;;  %v861_v59 = vsel %vm780_vm2, %v846_v32, %v860_v40 }
 0x1dd   : > { %v909_v4 = vsel %vm780_vm2, %v2152_v44, %v908_v60  ;;  %v921_v5 = vsel %vm780_vm2, %v2153_v43, %v920_v58  ;;  %v873_v61 = vsel %vm780_vm2, %v857_v37, %v872_v41  ;;  %v859_v62 = vsel %vm780_vm2, %v858_v49, %v840_v27 }
 0x1de   : > { %v917_v6 = vperm.slane %v909_v4, %v2794_v20  ;;  %v929_v7 = vperm.slane %v921_v5, %v2794_v20  ;;  %v930_v8 = vrot.slane %v925_v0, 4  ;;  %v932_v9 = vrot.slane %v913_v63, 4 }
 0x1df   : > { %v871_v2 = vsel %vm780_vm2, %v870_v53, %v851_v19  ;;  %v865_v11 = vperm.slane %v859_v62, %v2804_v35 }
 0x1e0   : > { %v931_v15 = vsel %vm780_vm2, %v930_v8, %v913_v63  ;;  %v933_v16 = vsel %vm780_vm2, %v925_v0, %v932_v9  ;;  %v942_v17 = vrot.slane %v929_v7, 4  ;;  %v944_v18 = vrot.slane %v917_v6, 4 }
 0x1e1   : > { %v937_v21 = vperm.slane %v931_v15, %v2804_v35  ;;  %v941_v22 = vperm.slane %v933_v16, %v2804_v35  ;;  %v881_v9 = vperm.slane %v873_v61, %v2804_v35 }
 0x1e2   : > { %v943_v25 = vsel %vm780_vm2, %v942_v17, %v917_v6  ;;  %v945_v26 = vsel %vm780_vm2, %v929_v7, %v944_v18  ;;  %v869_v7 = vperm.slane %v861_v59, %v2804_v35  ;;  %v877_v18 = vperm.slane %v871_v2, %v2804_v35 }
 0x1e3   : > { %v949_v28 = vperm.slane %v943_v25, %v2804_v35  ;;  %v953_v29 = vperm.slane %v945_v26, %v2804_v35  ;;  %v954_v30 = vrot.slane %v937_v21, 4  ;;  %v956_v31 = vrot.slane %v941_v22, 4 }
 0x1e4   : > { %v888_v23 = vrot.slane %v869_v7, 4 }
 0x1e5   : > { %v957_v33 = vsel %vm780_vm2, 0.0, %v956_v31  ;;  %v958_v34 = vrot.slane %v949_v28, 4  ;;  %v960_v36 = vrot.slane %v953_v29, 4  ;;  %v962_v38 = vsel %vm780_vm2, %v956_v31, %v937_v21 }
 0x1e6   : > { %v967_v39 = vrot.slane %v957_v33, 4  ;;  %v955_v42 = vsel %vm780_vm2, 0.0, %v954_v30  ;;  %v966_v44 = vperm.slane %v962_v38, %v2794_v20  ;;  %v886_v29 = vrot.slane %v881_v9, 4 }
 0x1e7   : > { %v961_v43 = vsel %vm780_vm2, 0.0, %v960_v36  ;;  %v973_v45 = vsel %vm780_vm2, %v960_v36, %v949_v28  ;;  %v959_v50 = vsel %vm780_vm2, 0.0, %v958_v34  ;;  %v884_v28 = vrot.slane %v865_v11, 4 }
 0x1e8   : > { %v978_v46 = vrot.slane %v961_v43, 4  ;;  %v968_v47 = vsel %vm780_vm2, %v967_v39, %v955_v42  ;;  %v977_v48 = vperm.slane %v973_v45, %v2794_v20  ;;  %v986_v52 = vrot.slane %v966_v44, 4 }
 0x1e9   : > { %v972_v51 = vperm.slane %v968_v47, %v2794_v20  ;;  %v889_v33 = vsel %vm780_vm2, %v881_v9, %v888_v23  ;;  %v882_v34 = vrot.slane %v877_v18, 4  ;;  %v885_v37 = vsel %vm780_vm2, %v877_v18, %v884_v28 }
 0x1ea   : > { %v979_v54 = vsel %vm780_vm2, %v978_v46, %v959_v50  ;;  %v998_v55 = vrot.slane %v977_v48, 4  ;;  %v887_v38 = vsel %vm780_vm2, %v886_v29, %v869_v7  ;;  %v893_v39 = vpack.c.bf16 %v889_v33, %v889_v33 }
 0x1eb   : > { %v983_v56 = vperm.slane %v979_v54, %v2794_v20  ;;  %v987_v57 = vsel %vm780_vm2, %v972_v51, %v986_v52  ;;  %v984_v58 = vrot.slane %v972_v51, 4  ;;  %v883_v40 = vsel %vm780_vm2, %v882_v34, %v865_v11 }
 0x1ec   : > { %v995_v60 = vperm.slane %v987_v57, %v2804_v35  ;;  %v891_v41 = vpack.c.bf16 %v885_v37, %v885_v37  ;;  %v892_v42 = vpack.c.bf16 %v887_v38, %v887_v38  ;;  %v890_v43 = vpack.c.bf16 %v883_v40, %v883_v40 }
 0x1ed   : > { %v999_v63 = vsel %vm780_vm2, %v983_v56, %v998_v55  ;;  %v985_v0 = vsel %vm780_vm2, %v984_v58, %v966_v44  ;;  %v996_v1 = vrot.slane %v983_v56, 4 }
 0x1ee   : > { %v1007_v4 = vperm.slane %v999_v63, %v2804_v35  ;;  %v1014_v5 = vrot.slane %v995_v60, 4  ;;  %v991_v6 = vperm.slane %v985_v0, %v2804_v35 }
 0x1ef   : > { %v997_v8 = vsel %vm780_vm2, %v996_v1, %v977_v48 }
 0x1f0   : > { %v1015_v12 = vsel %vm780_vm2, %v1007_v4, %v1014_v5  ;;  %v1003_v14 = vperm.slane %v997_v8, %v2804_v35  ;;  %v1010_v15 = vrot.slane %v991_v6, 4  ;;  %v1012_v16 = vrot.slane %v1007_v4, 4 }
 0x1f1   : > { %v1019_v17 = vpack.c.bf16 %v1015_v12, %v1015_v12 }
 0x1f2   : > { %v1011_v19 = vsel %vm780_vm2, %v1003_v14, %v1010_v15  ;;  %v1013_v21 = vsel %vm780_vm2, %v1012_v16, %v995_v60  ;;  %v1008_v22 = vrot.slane %v1003_v14, 4 }
 0x1f3   : > { %v1208_v24 = vsel %vm1146_vm3, %v1019_v17, 0  ;;  %v1017_v25 = vpack.c.bf16 %v1011_v19, %v1011_v19  ;;  %v1018_v26 = vpack.c.bf16 %v1013_v21, %v1013_v21 }
 0x1f4   : > { %1217 = vmatpush.bf16.xpose.msrb.mxu0 %v1208_v24  ;;  %v1009_v27 = vsel %vm780_vm2, %v1008_v22, %v991_v6 }
 0x1f5   : > { %v1170_v30 = vsel %vm1146_vm3, %v1017_v25, 0  ;;  %v1189_v31 = vsel %vm1146_vm3, %v1018_v26, 0  ;;  %v1016_v32 = vpack.c.bf16 %v1009_v27, %v1009_v27 }
 0x1f6   : > { %1179 = vmatpush.bf16.xpose.msra.mxu2 %v1170_v30  ;;  %1198 = vmatpush.bf16.xpose.msra.mxu3 %v1189_v31 }
 0x1f7   : > { %v1151_v36 = vsel %vm1146_vm3, %v1016_v32, 0 }
 0x1f8   : > { %1160 = vmatpush.bf16.xpose.msra.mxu1 %v1151_v36 }
 0x1fb   : > { %1957 = vmatmul.msk.bf16.vlgmr.msrb.gmra.mxu0 %vm1146_vm3, %v893_v39 }
 0x1fd   : > { %1955 = vmatmul.msk.bf16.vlgmr.msra.gmra.mxu2 %vm1146_vm3, %v891_v41  ;;  %1956 = vmatmul.msk.bf16.vlgmr.msra.gmra.mxu3 %vm1146_vm3, %v892_v42 }
 0x1ff   : > { %1954 = vmatmul.msk.bf16.vlgmr.msra.gmra.mxu1 %vm1146_vm3, %v890_v43 }
 0x278   : > { %v1219_v44 = vpop.f32.mrf.mxu0 }
 0x279   : > { %v1232_v45 = vsel %vm1146_vm3, %v1219_v44, -inf }
 0x27a   : > { %1233 = vmax.xlane.f32.xlu2 %v1232_v45 }
 0x27c   : > { %v1162_v46 = vpop.f32.mrf.mxu1 }
 0x27d   : > { %v1223_v47 = vsel %vm1146_vm3, %v1162_v46, -inf }
 0x27e   : > { %1224 = vmax.xlane.f32.xlu1 %v1223_v47 }
 0x280   : > { %v1181_v48 = vpop.f32.mrf.mxu2  ;;  %v1200_v49 = vpop.f32.mrf.mxu3 }
 0x281   : > { %v1221_v50 = vpop.f32.mrf.mxu0  ;;  %v1229_v51 = vsel %vm1146_vm3, %v1200_v49, -inf  ;;  %v1226_v52 = vsel %vm1146_vm3, %v1181_v48, -inf }
 0x282   : > { %1230 = vmax.xlane.f32.xlu2 %v1229_v51  ;;  %1227 = vmax.xlane.f32.xlu0 %v1226_v52 }
 0x284   : > { %v1164_v53 = vpop.f32.mrf.mxu1 }
 0x288   : > { %v1183_v54 = vpop.f32.mrf.mxu2  ;;  %v1202_v55 = vpop.f32.mrf.mxu3 }
 0x296   : > { %2160 = vrot.lane.b32.xlu0 %v2789_v13, %s2452_s3 }
 0x29a   : > { %2155 = vrot.lane.b32.xlu2 %v2786_v10, %s2452_s3 }
 0x2ed   : > { %v1234_v56 = vpop.xlane.xlu2 %1233 }
 0x2ee   : > { %v1238_v57 = vsub.f32 %v1219_v44, %v1234_v56 }
 0x2f0   : > { %v1245_v58 = vmul.f32 1.442695, %v1238_v57 }
 0x2f1   : > { %v1225_v13 = vpop.xlane.xlu1 %1224 }
 0x2f2   : > { %2172 = vpow2.f32 %v1245_v58  ;;  %v1235_v10 = vsub.f32 %v1162_v46, %v1225_v13 }
 0x2f4   : > { %v1239_v7 = vmul.f32 1.442695, %v1235_v10 }
 0x2f5   : > { %v1231_v59 = vpop.xlane.xlu2 %1230  ;;  %v1228_v60 = vpop.xlane.xlu0 %1227 }
 0x2f6   : > { %v1237_v61 = vsub.f32 %v1200_v49, %v1231_v59  ;;  %v1236_v0 = vsub.f32 %v1181_v48, %v1228_v60 }
 0x2f8   : > { %v2890_v62 = vpop.eup %2172  ;;  %v1243_v63 = vmul.f32 1.442695, %v1237_v61  ;;  %v1241_v2 = vmul.f32 1.442695, %v1236_v0 }
 0x2f9   : > { %v1256_v1 = vsel %vm1146_vm3, %v2890_v62, 0.0 }
 0x2fa   : > { %2174 = vpow2.f32 %v1243_v63  ;;  %1257 = vadd.xlane.f32.xlu0 %v1256_v1 }
 0x2fb   : > { %2176 = vpow2.f32 %v1241_v2 }
 0x2fc   : > { %2178 = vpow2.f32 %v1239_v7 }
 0x2fd   : > { %v2156_v5 = vpop.permute.xlu2 %2155 }
 0x2fe   : > { %v2158_v8 = vunpack.i.h.bf16 %v2156_v5  ;;  %v2157_v9 = vunpack.i.l.bf16 %v2156_v5 }
 0x300   : > { %v2894_v4 = vpop.eup %2174  ;;  %v1046_v12 = vrot.slane %v2158_v8, 4  ;;  %v1034_v15 = vrot.slane %v2157_v9, 4 }
 0x301   : > { %v1253_v6 = vsel %vm1146_vm3, %v2894_v4, 0.0  ;;  %v2898_v11 = vpop.eup %2176 }
 0x302   : > { %1254 = vadd.xlane.f32.xlu1 %v1253_v6  ;;  %v1250_v18 = vsel %vm1146_vm3, %v2898_v11, 0.0  ;;  %v2908_v28 = vpop.eup %2178 }
 0x303   : > { %v1247_v40 = vsel %vm1146_vm3, %v2908_v28, 0.0 }
 0x308   : > { %v2161_v14 = vpop.permute.xlu0 %2160 }
 0x309   : > { %v2163_v16 = vunpack.i.h.bf16 %v2161_v14  ;;  %v2162_v17 = vunpack.i.l.bf16 %v2161_v14 }
 0x30a   : > { %1251 = vadd.xlane.f32.xlu1 %v1250_v18 }
 0x30b   : > { %v1044_v19 = vrot.slane %v2163_v16, 4  ;;  %v1047_v21 = vsel %vm780_vm2, %v2163_v16, %v1046_v12  ;;  %v1032_v22 = vrot.slane %v2162_v17, 4  ;;  %v1035_v23 = vsel %vm780_vm2, %v2162_v17, %v1034_v15 }
 0x30c   : > { %v1055_v24 = vperm.slane %v1047_v21, %v2794_v20  ;;  %v1043_v25 = vperm.slane %v1035_v23, %v2794_v20 }
 0x30d   : > { %v1045_v26 = vsel %vm780_vm2, %v1044_v19, %v2158_v8  ;;  %v1033_v27 = vsel %vm780_vm2, %v1032_v22, %v2157_v9 }
 0x30e   : > { %v1051_v29 = vperm.slane %v1045_v26, %v2794_v20  ;;  %v1068_v30 = vrot.slane %v1055_v24, 4  ;;  %v1039_v31 = vperm.slane %v1033_v27, %v2794_v20  ;;  %v1070_v32 = vrot.slane %v1043_v25, 4 }
 0x310   : > { %v1056_v33 = vrot.slane %v1051_v29, 4  ;;  %v1058_v34 = vrot.slane %v1039_v31, 4  ;;  %v1069_v36 = vsel %vm780_vm2, %v1068_v30, %v1043_v25  ;;  %v1071_v37 = vsel %vm780_vm2, %v1055_v24, %v1070_v32 }
 0x311   : > { %v1075_v38 = vperm.slane %v1069_v36, %v2804_v35  ;;  %v1079_v39 = vperm.slane %v1071_v37, %v2804_v35 }
 0x312   : > { %v1057_v41 = vsel %vm780_vm2, %v1056_v33, %v1039_v31  ;;  %v1059_v42 = vsel %vm780_vm2, %v1051_v29, %v1058_v34  ;;  %1248 = vadd.xlane.f32.xlu1 %v1247_v40 }
 0x313   : > { %v1063_v43 = vperm.slane %v1057_v41, %v2804_v35  ;;  %v1067_v44 = vperm.slane %v1059_v42, %v2804_v35  ;;  %v1084_v45 = vrot.slane %v1075_v38, 4  ;;  %v1086_v46 = vrot.slane %v1079_v39, 4 }
 0x315   : > { %v1080_v47 = vrot.slane %v1063_v43, 4  ;;  %v1082_v48 = vrot.slane %v1067_v44, 4  ;;  %v1087_v49 = vsel %vm780_vm2, 0.0, %v1086_v46  ;;  %v1099_v50 = vsel %vm780_vm2, %v1086_v46, %v1075_v38 }
 0x316   : > { %v1104_v51 = vrot.slane %v1087_v49, 4  ;;  %v1085_v53 = vsel %vm780_vm2, 0.0, %v1084_v45  ;;  %v1103_v55 = vperm.slane %v1099_v50, %v2794_v20 }
 0x317   : > { %v1083_v52 = vsel %vm780_vm2, 0.0, %v1082_v48  ;;  %v1088_v54 = vsel %vm780_vm2, %v1082_v48, %v1063_v43  ;;  %v1081_v59 = vsel %vm780_vm2, 0.0, %v1080_v47 }
 0x318   : > { %v1093_v56 = vrot.slane %v1083_v52, 4  ;;  %v1092_v57 = vperm.slane %v1088_v54, %v2794_v20  ;;  %v1105_v58 = vsel %vm780_vm2, %v1104_v51, %v1085_v53  ;;  %v1124_v61 = vrot.slane %v1103_v55, 4 }
 0x319   : > { %v1109_v60 = vperm.slane %v1105_v58, %v2794_v20 }
 0x31a   : > { %v1094_v63 = vsel %vm780_vm2, %v1093_v56, %v1081_v59  ;;  %v1112_v0 = vrot.slane %v1092_v57, 4 }
 0x31b   : > { %v1098_v1 = vperm.slane %v1094_v63, %v2794_v20  ;;  %v1125_v2 = vsel %vm780_vm2, %v1109_v60, %v1124_v61  ;;  %v1122_v13 = vrot.slane %v1109_v60, 4 }
 0x31c   : > { %v1133_v10 = vperm.slane %v1125_v2, %v2804_v35 }
 0x31d   : > { %v1113_v5 = vsel %vm780_vm2, %v1098_v1, %v1112_v0  ;;  %v1110_v6 = vrot.slane %v1098_v1, 4  ;;  %v1123_v7 = vsel %vm780_vm2, %v1122_v13, %v1103_v55 }
 0x31e   : > { %v1121_v8 = vperm.slane %v1113_v5, %v2804_v35  ;;  %v1138_v9 = vrot.slane %v1133_v10, 4  ;;  %v1129_v12 = vperm.slane %v1123_v7, %v2804_v35 }
 0x31f   : > { %v1111_v14 = vsel %vm780_vm2, %v1110_v6, %v1092_v57 }
 0x320   : > { %v1139_v15 = vsel %vm780_vm2, %v1138_v9, %v1121_v8  ;;  %v1140_v16 = vrot.slane %v1121_v8, 4  ;;  %v1117_v17 = vperm.slane %v1111_v14, %v2804_v35  ;;  %v1134_v18 = vrot.slane %v1129_v12, 4 }
 0x321   : > { %v1144_v19 = vpack.c.bf16 %v1139_v15, %v1139_v15 }
 0x322   : > { %v1135_v21 = vsel %vm780_vm2, %v1134_v18, %v1117_v17  ;;  %v1141_v22 = vsel %vm780_vm2, %v1133_v10, %v1140_v16  ;;  %v1136_v23 = vrot.slane %v1117_v17, 4 }
 0x323   : > { %v1314_v24 = vsel %vm1274_vm4, %v1144_v19, 0  ;;  %v1142_v25 = vpack.c.bf16 %v1135_v21, %v1135_v21  ;;  %v1145_v26 = vpack.c.bf16 %v1141_v22, %v1141_v22 }
 0x324   : > { %1323 = vmatpush.bf16.msrb.mxu3 %v1314_v24  ;;  %v1137_v27 = vsel %vm780_vm2, %v1129_v12, %v1136_v23 }
 0x325   : > { %v1276_v29 = vsel %vm1274_vm4, %v1142_v25, 0  ;;  %v1333_v30 = vsel %vm1274_vm4, %v1145_v26, 0  ;;  %v1143_v31 = vpack.c.bf16 %v1137_v27, %v1137_v27 }
 0x326   : > { %1285 = vmatpush.bf16.msrb.mxu1 %v1276_v29  ;;  %1342 = vmatpush.bf16.msra.mxu0 %v1333_v30 }
 0x327   : > { %v1295_v32 = vsel %vm1274_vm4, %v1143_v31, 0 }
 0x328   : > { %1304 = vmatpush.bf16.msrb.mxu2 %v1295_v32 }
 0x36d   : > { %v1258_v33 = vpop.xlane.xlu0 %1257 }
 0x36e   : > { %2180 = vrcp.f32 %v1258_v33 }
 0x374   : > { %v2181_v34 = vpop.eup %2180 }
 0x375   : > { %v1266_v36 = vmul.f32 %v2181_v34, %v2890_v62  ;;  %v1255_v37 = vpop.xlane.xlu1 %1254 }
 0x376   : > { %2182 = vrcp.f32 %v1255_v37 }
 0x377   : > { %v1270_v38 = vpack.c.bf16 %v1266_v36, %v1266_v36 }
 0x379   : > { %1961 = vmatmul.msk.bf16.vlgmr.msra.gmra.mxu0 %vm1146_vm3, %v1270_v38 }
 0x37c   : > { %v2183_v39 = vpop.eup %2182 }
 0x37d   : > { %v1265_v40 = vmul.f32 %v2183_v39, %v2894_v4  ;;  %v1252_v41 = vpop.xlane.xlu1 %1251 }
 0x37e   : > { %2184 = vrcp.f32 %v1252_v41 }
 0x37f   : > { %v1269_v42 = vpack.c.bf16 %v1265_v40, %v1265_v40 }
 0x381   : > { %1960 = vmatmul.msk.bf16.vlgmr.msrb.gmra.mxu3 %vm1146_vm3, %v1269_v42 }
 0x384   : > { %v2185_v43 = vpop.eup %2184 }
 0x385   : > { %v1264_v44 = vmul.f32 %v2185_v43, %v2898_v11  ;;  %v1249_v45 = vpop.xlane.xlu1 %1248 }
 0x386   : > { %2186 = vrcp.f32 %v1249_v45 }
 0x387   : > { %v1268_v46 = vpack.c.bf16 %v1264_v44, %v1264_v44 }
 0x389   : > { %1959 = vmatmul.msk.bf16.vlgmr.msrb.gmra.mxu2 %vm1146_vm3, %v1268_v46 }
 0x38c   : > { %v2187_v62 = vpop.eup %2186 }
 0x38d   : > { %v1263_v47 = vmul.f32 %v2187_v62, %v2908_v28 }
 0x38f   : > { %v1267_v48 = vpack.c.bf16 %v1263_v47, %v1263_v47 }
 0x391   : > { %1958 = vmatmul.msk.bf16.vlgmr.msrb.gmra.mxu1 %vm1146_vm3, %v1267_v48 }
 0x3f6   : > { %v1344_v4 = vpop.f32.mrf.mxu0 }
 0x3f7   : > { %v1360_v51 = vrot.slane %v1344_v4, 4 }
 0x3fe   : > { %v1346_v49 = vpop.f32.mrf.mxu0 }
 0x404   : > { %v1325_v50 = vpop.f32.mrf.mxu3 }
 0x405   : > { %v1348_v54 = vrot.slane %v1325_v50, 4 }
 0x40c   : > { %v1306_v52 = vpop.f32.mrf.mxu2  ;;  %v1327_v53 = vpop.f32.mrf.mxu3 }
 0x40d   : > { %v1361_v11 = vsel %vm780_vm2, %v1360_v51, %v1306_v52  ;;  %v1362_v55 = vrot.slane %v1306_v52, 4 }
 0x40e   : > { %v1367_v56 = vperm.slane %v1361_v11, %v2794_v20  ;;  %v1287_v57 = vpop.f32.mrf.mxu1 }
 0x40f   : > { %v1363_v58 = vsel %vm780_vm2, %v1344_v4, %v1362_v55  ;;  %v1349_v28 = vsel %vm780_vm2, %v1348_v54, %v1287_v57  ;;  %v1350_v59 = vrot.slane %v1287_v57, 4  ;;  %v2008_v55 = vld [vmem:[%s2745_s17] sm:$0xff] }
 0x410   : > { %v1371_v60 = vperm.slane %v1363_v58, %v2794_v20  ;;  %v1372_v61 = vrot.slane %v1367_v56, 4  ;;  %v1355_v63 = vperm.slane %v1349_v28, %v2794_v20 }
 0x411   : > { %v1351_v0 = vsel %vm780_vm2, %v1325_v50, %v1350_v59 }
 0x412   : > { %v1384_v1 = vrot.slane %v1371_v60, 4  ;;  %v1359_v2 = vperm.slane %v1351_v0, %v2794_v20  ;;  %v1373_v13 = vsel %vm780_vm2, %v1372_v61, %v1355_v63  ;;  %v1374_v10 = vrot.slane %v1355_v63, 4  ;;  %v2165_v63 = vld [vmem:[%s3175_s7] ss:$0 sm:$0xff] }
 0x413   : > { %v1379_v5 = vperm.slane %v1373_v13, %v2804_v35 }
 0x414   : > { %v1375_v6 = vsel %vm780_vm2, %v1367_v56, %v1374_v10  ;;  %v1385_v7 = vsel %vm780_vm2, %v1384_v1, %v1359_v2  ;;  %v1386_v8 = vrot.slane %v1359_v2, 4  ;;  %v1308_v9 = vpop.f32.mrf.mxu2 }
 0x415   : > { %v1383_v12 = vperm.slane %v1375_v6, %v2804_v35  ;;  %v1391_v14 = vperm.slane %v1385_v7, %v2804_v35  ;;  %v1396_v18 = vrot.slane %v1379_v5, 4 }
 0x416   : > { %v1387_v15 = vsel %vm780_vm2, %v1371_v60, %v1386_v8  ;;  %v1289_v16 = vpop.f32.mrf.mxu1 }
 0x417   : > { %v1395_v17 = vperm.slane %v1387_v15, %v2804_v35  ;;  %v1398_v19 = vrot.slane %v1383_v12, 4  ;;  %v1400_v22 = vrot.slane %v1391_v14, 4  ;;  %v1397_v27 = vsel %vm780_vm2, 0.0, %v1396_v18 }
 0x419   : > { %v1399_v21 = vsel %vm780_vm2, 0.0, %v1398_v19  ;;  %v1402_v23 = vrot.slane %v1395_v17, 4  ;;  %v1404_v24 = vsel %vm780_vm2, %v1398_v19, %v1379_v5  ;;  %v1401_v34 = vsel %vm780_vm2, 0.0, %v1400_v22  ;;  %v2011_v19 = vld [vmem:[%s2754_s5 + $0x8] sm:$0xff]  ;;  %v2015_v22 = vld [vmem:[%s2764_s15 + $0x18] sm:$0xff] }
 0x41a   : > { %v1409_v25 = vrot.slane %v1399_v21, 4  ;;  %v1408_v26 = vperm.slane %v1404_v24, %v2794_v20  ;;  %v2456_v5 = vmov 32.0   ;;  %1582 = vmatpush.bf16.msra.mxu2 %v2011_v19  ;;  %v2010_v21 = vld [vmem:[%s2754_s5] sm:$0xff]  ;;  %1635 = vmatpush.bf16.msra.mxu3 %v2015_v22  ;;  %s3176_s5 = scalar_lea.vmem [#allocation8], %s2716_s13 }
 0x41b   : > { %v1403_v29 = vsel %vm780_vm2, 0.0, %v1402_v23  ;;  %v1415_v30 = vsel %vm780_vm2, %v1402_v23, %v1391_v14  ;;  %2188 = vrcp.f32 %v2456_v5 }
 0x41c   : > { %v1420_v31 = vrot.slane %v1403_v29, 4  ;;  %v1410_v32 = vsel %vm780_vm2, %v1409_v25, %v1397_v27  ;;  %v1419_v33 = vperm.slane %v1415_v30, %v2794_v20  ;;  %v1428_v37 = vrot.slane %v1408_v26, 4  ;;  %v2014_v25 = vld [vmem:[%s2764_s15 + $0x10] sm:$0xff] }
 0x41d   : > { %v1414_v36 = vperm.slane %v1410_v32, %v2794_v20 }
 0x41e   : > { %v1421_v38 = vsel %vm780_vm2, %v1420_v31, %v1401_v34  ;;  %v1440_v39 = vrot.slane %v1419_v33, 4  ;;  %1583 = vmatpush.bf16.msra.mxu2 %v2010_v21  ;;  %1636 = vmatpush.bf16.msra.mxu3 %v2014_v25  ;;  %v2166_v34 = vld [vmem:[%s3176_s5] ss:$0 sm:$0xff] }
 0x41f   : > { %v1425_v40 = vperm.slane %v1421_v38, %v2794_v20  ;;  %v1426_v41 = vrot.slane %v1414_v36, 4  ;;  %v1429_v42 = vsel %vm780_vm2, %v1414_v36, %v1428_v37  ;;  %v2167_v37 = vld [vmem:[%s3178_s28] ss:$0 sm:$0xff] }
 0x420   : > { %v1437_v48 = vperm.slane %v1429_v42, %v2804_v35  ;;  %v2013_v42 = vld [vmem:[%s2764_s15 + $0x8] sm:$0xff] }
 0x421   : > { %v1441_v43 = vsel %vm780_vm2, %v1425_v40, %v1440_v39  ;;  %v1427_v44 = vsel %vm780_vm2, %v1426_v41, %v1408_v26  ;;  %v1438_v45 = vrot.slane %v1425_v40, 4  ;;  %v2189_v6 = vpop.eup %2188 }
 0x422   : > { %v1449_v46 = vperm.slane %v1441_v43, %v2804_v35  ;;  %v1433_v62 = vperm.slane %v1427_v44, %v2804_v35  ;;  %v1456_v54 = vrot.slane %v1437_v48, 4  ;;  %v1519_v7 = vmul.f32 32.0, %v2189_v6  ;;  %1637 = vmatpush.bf16.msra.mxu3 %v2013_v42  ;;  %v2012_v43 = vld [vmem:[%s2764_s15] sm:$0xff] }
 0x423   : > { %v1439_v47 = vsel %vm780_vm2, %v1438_v45, %v1419_v33  ;;  %vm1523_vm7 = vweird.f32 %v2189_v6  ;;  %v2168_v44 = vld [vmem:[%s710_s11] ss:$0 sm:$0xff]  ;;  %s3181_s11 = scalar_lea.vmem [#allocation9], %s2716_s13 }
 0x424   : > { %v1454_v4 = vrot.slane %v1449_v46, 4  ;;  %v1445_v20 = vperm.slane %v1439_v47, %v2804_v35  ;;  %v1452_v49 = vrot.slane %v1433_v62, 4  ;;  %v1457_v11 = vsel %vm780_vm2, %v1449_v46, %v1456_v54  ;;  %v2009_v35 = vld [vmem:[%s2745_s17 + $0x8] sm:$0xff] }
 0x425   : > { %1505 = vmatpush.bf16.msra.mxu1 %v2009_v35  ;;  %v1520_v8 = vsub.f32 1.0, %v1519_v7 }
 0x426   : > { %v1455_v50 = vsel %vm780_vm2, %v1454_v4, %v1437_v48  ;;  %v1450_v51 = vrot.slane %v1445_v20, 4  ;;  %v1453_v52 = vsel %vm780_vm2, %v1445_v20, %v1452_v49  ;;  %1638 = vmatpush.bf16.msra.mxu3 %v2012_v43  ;;  %v2169_v4 = vld [vmem:[%s718_s0] ss:$0 sm:$0xff] }
 0x427   : > { %1463 = vrot.lane.b32.xlu1 %v1455_v50, %s2453_s21  ;;  %1459 = vrot.lane.b32.xlu2 %v1453_v52, %s2454_s2  ;;  %v1521_v9 = vmul.f32 %v2189_v6, %v1520_v8 }
 0x428   : > { %v1451_v53 = vsel %vm780_vm2, %v1450_v51, %v1433_v62 }
 0x429   : > { %1506 = vmatpush.bf16.msra.mxu1 %v2008_v55  ;;  %v1522_v12 = vadd.f32 %v2189_v6, %v1521_v9 }
 0x42b   : > { %v1524_v14 = vsel %vm1523_vm7, %v2189_v6, %v1522_v12 }
 0x42f   : > { %1467 = vrot.lane.b32.xlu2 %v1457_v11, %s2455_s1 }
 0x481   : > { %v1460_v56 = vpop.permute.xlu2 %1459 }
 0x482   : > { %v1470_v57 = vsel %vm1146_vm3, %v1451_v53, %v1460_v56 }
 0x489   : > { %v1468_v28 = vpop.permute.xlu2 %1467 }
 0x499   : > { %v1464_v58 = vpop.permute.xlu1 %1463 }
 0x49a   : > { %v1472_v59 = vsel %vm1471_vm5, %v1470_v57, %v1464_v58 }
 0x49b   : > { %v1474_v60 = vsel %vm1473_vm6, %v1472_v59, %v1468_v28 }
 0x49c   : > { %v1475_v61 = vpack.c.bf16 %v1474_v60, %v1474_v60 }
 0x49e   : > { %1970 = vmatmul.msk.bf16.vlgmr.msra.gmra.mxu1 %vm752_vm1, %v1475_v61 }
 0x51b   : > { %v1508_v0 = vpop.f32.mrf.mxu1 }
 0x51c   : > { %v1509_v1 = vadd.f32 %v2165_v63, %v1508_v0 }
 0x51e   : > { %v1512_v2 = vadd.f32 %v1509_v1, %v2779_v3  ;;  %v2170_v1 = vld [vmem:[%s3181_s11] ss:$0 sm:$0xff] }
 0x520   : > { %v1515_v13 = vsel %vm752_vm1, %v1512_v2, 0.0 }
 0x521   : > { %1516 = vadd.xlane.f32.xlu2 %v1515_v13  ;;  %v2171_v13 = vld [vmem:[%s721_s25] ss:$0 sm:$0xff] }
 0x523   : > { %v1510_v10 = vpop.f32.mrf.mxu1 }
 0x594   : > { %v1517_v15 = vpop.xlane.xlu2 %1516 }
 0x595   : > { %v1525_v16 = vmul.f32 %v1524_v14, %v1517_v15 }
 0x597   : > { %v1526_v3 = vsub.f32 %v1512_v2, %v1525_v16 }
 0x599   : > { %v1527_v17 = vmul.f32 %v1526_v3, %v1526_v3 }
 0x59b   : > { %v1528_v18 = vsel %vm752_vm1, %v1527_v17, 0.0 }
 0x59c   : > { %1529 = vadd.xlane.f32.xlu1 %v1528_v18 }
 0x60f   : > { %v1530_v23 = vpop.xlane.xlu1 %1529 }
 0x610   : > { %v1531_v24 = vmul.f32 %v1530_v23, %v1524_v14 }
 0x612   : > { %v1532_v26 = vadd.f32 1e-05, %v1531_v24 }
 0x614   : > { %2190 = vrsqrt.f32 %v1532_v26  ;;  %vm1539_vm9 = vweird.f32 %v1532_v26 }
 0x61a   : > { %v2191_v27 = vpop.eup %2190 }
 0x61b   : > { %v1534_v29 = vmul.f32 %v2191_v27, %v1532_v26  ;;  %vm1540_vm8 = vweird.f32 %v2191_v27 }
 0x61c   : > { %vm1541_vm10 = vmor %vm1539_vm9, %vm1540_vm8 }
 0x61d   : > { %v1535_v30 = vmul.f32 %v2191_v27, %v1534_v29 }
 0x61f   : > { %v1536_v31 = vmul.f32 0.5, %v1535_v30 }
 0x621   : > { %v1537_v32 = vsub.f32 1.5, %v1536_v31 }
 0x623   : > { %v1538_v33 = vmul.f32 %v2191_v27, %v1537_v32 }
 0x625   : > { %v1542_v36 = vsel %vm1541_vm10, %v2191_v27, %v1538_v33 }
 0x626   : > { %v1543_v38 = vmul.f32 %v1542_v36, %v1526_v3 }
 0x628   : > { %v1547_v39 = vmul.f32 %v2166_v34, %v1543_v38 }
 0x62a   : > { %v1551_v40 = vadd.f32 %v2167_v37, %v1547_v39 }
 0x62c   : > { %v1552_v41 = vpack.c.bf16 %v1551_v40, %v1551_v40 }
 0x62e   : > { %1979 = vmatmul.msk.bf16.vlgmr.msra.gmra.mxu2 %vm752_vm1, %v1552_v41 }
 0x6b1   : > { %v1585_v45 = vpop.f32.mrf.mxu2 }
 0x6b2   : > { %v1586_v46 = vadd.f32 %v2168_v44, %v1585_v45 }
 0x6b4   : > { %v1589_v62 = vmax.f32 %v1586_v46, 0.0 }
 0x6b6   : > { %v1590_v47 = vpack.c.bf16 %v1589_v62, %v1589_v62 }
 0x6b8   : > { %1996 = vmatmul.msk.bf16.vlgmr.msra.gmra.mxu3 %vm1627_vm11, %v1590_v47 }
 0x6b9   : > { %v1587_v48 = vpop.f32.mrf.mxu2 }
 0x73b   : > { %v1640_v20 = vpop.f32.mrf.mxu3 }
 0x73c   : > { %v1641_v49 = vadd.f32 %v2169_v4, %v1640_v20 }
 0x73e   : > { %v1644_v50 = vadd.f32 %v1641_v49, %v1551_v40 }
 0x740   : > { %v1647_v51 = vsel %vm752_vm1, %v1644_v50, 0.0 }
 0x741   : > { %1648 = vadd.xlane.f32.xlu0 %v1647_v51 }
 0x743   : > { %v1642_v52 = vpop.f32.mrf.mxu3 }
 0x7b4   : > { %v1649_v53 = vpop.xlane.xlu0 %1648 }
 0x7b5   : > { %v1650_v54 = vmul.f32 %v1649_v53, %v1524_v14 }
 0x7b7   : > { %v1651_v11 = vsub.f32 %v1644_v50, %v1650_v54 }
 0x7b9   : > { %v1652_v35 = vmul.f32 %v1651_v11, %v1651_v11 }
 0x7bb   : > { %v1653_v55 = vsel %vm752_vm1, %v1652_v35, 0.0 }
 0x7bc   : > { %1654 = vadd.xlane.f32.xlu0 %v1653_v55 }
 0x82f   : > { %v1655_v56 = vpop.xlane.xlu0 %1654 }
 0x830   : > { %v1656_v57 = vmul.f32 %v1655_v56, %v1524_v14 }
 0x832   : > { %v1657_v58 = vadd.f32 1e-05, %v1656_v57 }
 0x834   : > { %2192 = vrsqrt.f32 %v1657_v58  ;;  %vm1664_vm13 = vweird.f32 %v1657_v58 }
 0x83a   : > { %v2193_v28 = vpop.eup %2192 }
 0x83b   : > { %v1659_v59 = vmul.f32 %v2193_v28, %v1657_v58  ;;  %vm1665_vm12 = vweird.f32 %v2193_v28 }
 0x83c   : > { %vm1666_vm14 = vmor %vm1664_vm13, %vm1665_vm12 }
 0x83d   : > { %v1660_v60 = vmul.f32 %v2193_v28, %v1659_v59 }
 0x83f   : > { %v1661_v61 = vmul.f32 0.5, %v1660_v60 }
 0x841   : > { %v1662_v63 = vsub.f32 1.5, %v1661_v61 }
 0x843   : > { %v1663_v0 = vmul.f32 %v2193_v28, %v1662_v63 }
 0x845   : > { %v1667_v2 = vsel %vm1666_vm14, %v2193_v28, %v1663_v0 }
 0x846   : > { %v1668_v10 = vmul.f32 %v1667_v2, %v1651_v11 }
 0x848   : > { %v1672_v5 = vmul.f32 %v2170_v1, %v1668_v10  ;;  %1681 = sbr.rel (%p1997_p9) target bundleno = 2126 (0x84e), region = 96 }
 0x84a   : > { %v1676_v6 = vadd.f32 %v2171_v13, %v1672_v5 }
 0x84c   : > { %1677 = vst.msk [vmem:[#allocation2] sm:$0xff] %vm752_vm1, %v1676_v6 }
 0x84d   : > { %1682 = vst.msk [vmem:[%s2776_s10] sm:$0xff] %vm752_vm1, %v1676_v6 }
 0x84e PF: > { %s3183_s13 = sld [smem:[#allocation20_spill]]  ;;  %s1696_s6 = sshll.u32 %s2776_s10, 4  ;;  %s1697_s6 = int_to_ptr.vmem [resolvable:$true] %s1696_s6 }
 0x84f   : > { %s3185_s25 = sld [smem:[#allocation41_spill]]  ;;  %s1684_s5 = scalar_lea.sflag [#allocation5], %s2704_s27 }
 0x854   : > { %s1999_s21 = sshll.u32 %s3183_s13, 3 }
 0x855   : > { %s3186_s1 = smov %s3185_s25  ;;  %s1694_s24 = scalar_lea.hbm %s3185_s25, %s1999_s21 }
 0x856   : > { %s1698_s7 = sshll.u32 %s1694_s24, 4  ;;  %s2334_s28 = scalar_lea.hbm %s3186_s1, 16  ;;  %s1699_s7 = int_to_ptr.hbm [resolvable:$true] %s1698_s7 }
 0x857   : > { %s2328_s14 = sshra.s32 %s1699_s7, 4  ;;  %s2329_s14 = int_to_ptr.hbm [resolvable:$true] %s2328_s14 }
 0x858   : > { %s2330_s17 = scalar_lea.hbm %s2329_s14, 8  ;;  %p2335_p5 = scmp.lt.s32.totalorder %s2329_s14, %s3186_s1 }
 0x859   : > { %p2331_p12 = scmp.ne.s32.totalorder %s2329_s14, %s2330_s17  ;;  %p2336_p6 = scmp.lt.s32.totalorder %s2334_s28, %s2330_s17 }
 0x85b   : > { %p2332_p13 = pnand %p2331_p12, %p2663_p0  ;;  %p2337_p10 = por %p2336_p6, %p2335_p5 }
 0x85d   : > { %p2333_p4 = pneg %p2332_p13 }
 0x85f   : > { %p2338_p1 = pnand %p2337_p10, %p2333_p4 }
 0x861   : > { %2341 = shalt.err (!%p2338_p1)
}
 0x862   : > { %2024 = dma.vmem_to_hbm [thread:$0]  (%p2663_p0), %s1697_s6, 128, %s1699_s7, %s1684_s5  }
 0x863 PF: > { %s3187_s27 = sld [smem:[#allocation17_spill]]  ;;  %p2044_p11 = scmp.ge.s32.totalorder %s2444_s18, 2 }
 0x865   : > { %p2040_p2 = pnand %p2044_p11, %p2670_p3 }
 0x867   : > { %p2041_p8 = pneg %p2040_p2 }
 0x869   : > { %s1710_s29 = sand.u32 1, %s3187_s27  }
 0x86a   : > { %s1711_s16 = scalar_lea.sflag [#allocation5], %s1710_s29 }
 0x86b   : > { %2399 = dma.done.wait (%p2041_p8), %s1711_s16, 128  }
 0x86c   : > { %2401 = vsyncadd (%p2041_p8), %s1711_s16, 4294967168  ;;  %s35_s18 = sadd.s32 1, %s2444_s18   ;;  %s3189_s12 = sld [smem:[#allocation16_spill]] }
 0x86d   : > { %p32_p7 = scmp.ge.s32.totalorder %s35_s18, 6   ;;  %s3190_s27 = sld [smem:[#allocation24_spill]] }
 0x86e   : > { %s3191_s28 = sld [smem:[#allocation18_spill]]  ;;  %s3198_s25 = smov %s2408_s26 }
 0x86f   : > { %s3192_s29 = sld [smem:[#allocation19_spill]] }
 0x870   : > { %s3193_s30 = sld [smem:[#allocation28_spill]]  ;;  %34 = sbr.rel (!%p32_p7) target bundleno = 27 (0x1b), region = 189 }
 0x871   : > { %s3194_s14 = sld [smem:[#allocation21_spill]] }
 0x872   : > { %s3195_s15 = sld [smem:[#allocation22_spill]]  ;;  %s3199_s26 = smov %s3189_s12 }
 0x873   : > { %s3196_s16 = sld [smem:[#allocation23_spill]] }
 0x874   : > { %s3197_s17 = sld [smem:[#allocation25_spill]] }
 0x875   :  { %1717 = vsyncpa [#allocation4], 1 }
 0x876   :  { %1719 = vsyncpa [#allocation4 + $0x1], 1 }
 0x877   :  { %1720 = vsyncpa [#allocation7], 1 }
 0x878   :  { %1722 = vsyncpa [#allocation7 + $0x1], 1 }
 0x879   :  { %1723 = vsyncpa [#allocation10], 1 }
 0x87a   :  { %1725 = vsyncpa [#allocation10 + $0x1], 1 }
 0x87b   :  { %1726 = vsyncpa [#allocation5], 1 }
 0x87c   :  { %1728 = vsyncpa [#allocation5 + $0x1], 1 }

</bundles_post_ra>
